<compile_context>
chip_gen: v7x
topology: tpu7x:2x2x1
jax: 0.10.0
libtpu: 0.0.40
codegen_flags: <defaults>
</compile_context>

<pallas_src>
import math

import jax
import jax.numpy as jnp
from jax.experimental import pallas as pl
from jax.experimental.pallas import tpu as pltpu

HIDDEN_DIM = 32
INPUT_DIM = 18
NUM_LAYERS = 2   # hard-coded as two explicit cells below (matches num_layers=2)
OUTPUT_DIM = 18
OUT_PAD = 128    # lane-padded fc output width (full vreg lane group)


def lstm_kernel(x_ref,                         # (T*Bp, INPUT_DIM) time-major, padded batch
                wih0_ref, whh0_ref, b0_ref,    # (D,4H), (H,4H), (1,4H)  [i/f/o cols pre-scaled by 0.5]
                wih1_ref, whh1_ref, b1_ref,    # (H,4H), (H,4H), (1,4H)  [i/f/o cols pre-scaled by 0.5]
                wfc_ref, bfc_ref,              # (H,OUT_PAD), (1,OUT_PAD)  [zero-padded lanes]
                out_ref):                      # (Bp, OUT_PAD)
    Bp = out_ref.shape[0]
    T = x_ref.shape[0] // Bp
    H = whh0_ref.shape[0]

    # ---- hoisted loads / broadcasts (outside the unrolled time loop) ----
    whh0 = whh0_ref[...]
    wih1 = wih1_ref[...]
    whh1 = whh1_ref[...]
    b1 = jnp.broadcast_to(b1_ref[...], (Bp, 4 * H))          # hoist broadcast once

    # Layer-0 input projection for ALL timesteps at once (bias folded in).
    gx0 = (jnp.dot(x_ref[...], wih0_ref[...], preferred_element_type=jnp.float32)
           + b0_ref[...])                                     # (T*Bp, 4H)

    def activate(gates, c):
        # gates: (Bp, 4H) pre-activations in PyTorch order [i | f | g | o],
        # with the i/f/o columns already pre-scaled by 0.5 via the weights, so
        # a single full-width tanh yields sigmoid via 0.5*t + 0.5.
        t = jnp.tanh(gates)                                   # one EUP push, 128 lanes
        s = 0.5 * t + 0.5                                     # sigmoid on i/f/o lanes
        i = s[:, 0 * H:1 * H]
        f = s[:, 1 * H:2 * H]
        g = t[:, 2 * H:3 * H]
        o = s[:, 3 * H:4 * H]
        c_new = f * c + i * g
        h_new = o * jnp.tanh(c_new)                           # second (32-lane) EUP push
        return h_new, c_new

    zeros = jnp.zeros((Bp, H), jnp.float32)
    h0 = c0 = h1 = c1 = zeros

    for t in range(T):                                        # fully unrolled, T static
        # Layer-1 recurrent contribution: depends only on h1_{t-1}, so it is
        # off this step's layer-0 dependent chain and overlaps with it.
        r1 = jnp.dot(h1, whh1, preferred_element_type=jnp.float32) + b1
        # Layer 0: only the recurrent matmul remains on the serial path.
        g0 = (gx0[t * Bp:(t + 1) * Bp]
              + jnp.dot(h0, whh0, preferred_element_type=jnp.float32))
        h0, c0 = activate(g0, c0)
        # Layer 1: input matmul on the fresh h0_t, recurrent part precomputed.
        g1 = jnp.dot(h0, wih1, preferred_element_type=jnp.float32) + r1
        h1, c1 = activate(g1, c1)

    # fc on the last timestep's top-layer hidden state (lane-padded output).
    out_ref[...] = (jnp.dot(h1, wfc_ref[...], preferred_element_type=jnp.float32)
                    + bfc_ref[...])


def _fold_half_into_ifo(arr, H):
    """Scale the i/f/o gate columns (PyTorch order i,f,g,o) by 0.5, keep g at 1.0."""
    scale = jnp.concatenate([
        jnp.full((H,), 0.5, jnp.float32),
        jnp.full((H,), 0.5, jnp.float32),
        jnp.ones((H,), jnp.float32),
        jnp.full((H,), 0.5, jnp.float32),
    ])
    return arr * scale   # broadcasts over the last (4H) axis


def lstm_forward(x, params):
    """x: (B, T, INPUT_DIM) float32 -> (B, OUTPUT_DIM) float32."""
    B, T, D = x.shape
    assert D == INPUT_DIM
    H = HIDDEN_DIM

    # Pad batch to a full sublane group (8 rows per f32 vreg). For throughput,
    # callers should batch many sequences per call (Bp can grow toward 128+).
    Bp = max(8, -(-B // 8) * 8)
    x_tm = jnp.transpose(x, (1, 0, 2))                        # (T, B, D) time-major
    if Bp != B:
        x_tm = jnp.pad(x_tm, ((0, 0), (0, Bp - B), (0, 0)))
    x2d = x_tm.reshape(T * Bp, D)                             # row index = t*Bp + b

    # Fold the sigmoid 0.5 pre-scale into the i/f/o columns of the LSTM
    # weights AND biases (g columns untouched) — removes the per-step
    # gate_scale multiply from the kernel's critical path.
    wih0 = _fold_half_into_ifo(params["wih0_T"], H)
    whh0 = _fold_half_into_ifo(params["whh0_T"], H)
    b0 = _fold_half_into_ifo(params["b0"], H)
    wih1 = _fold_half_into_ifo(params["wih1_T"], H)
    whh1 = _fold_half_into_ifo(params["whh1_T"], H)
    b1 = _fold_half_into_ifo(params["b1"], H)

    # Lane-pad the fc weights/bias to a full 128-lane output so the final
    # store is unmasked; slice back to OUTPUT_DIM outside the kernel.
    wfc = jnp.pad(params["wfc_T"], ((0, 0), (0, OUT_PAD - OUTPUT_DIM)))
    bfc = jnp.pad(params["bfc"], ((0, 0), (0, OUT_PAD - OUTPUT_DIM)))

    vmem = pl.BlockSpec(memory_space=pltpu.MemorySpace.VMEM)
    out = pl.pallas_call(
        lstm_kernel,
        out_shape=jax.ShapeDtypeStruct((Bp, OUT_PAD), jnp.float32),
        in_specs=[vmem] * 9,
        out_specs=vmem,
    )(x2d, wih0, whh0, b0, wih1, whh1, b1, wfc, bfc)
    return out[:B, :OUTPUT_DIM]


def init_params(key):
    """Deterministic init matching PyTorch shapes (nn.LSTM + nn.Linear)."""
    H, D, O = HIDDEN_DIM, INPUT_DIM, OUTPUT_DIM
    k_lstm = 1.0 / math.sqrt(H)
    k_fc = 1.0 / math.sqrt(H)
    keys = jax.random.split(key, 10)

    def u(k, shape, bound):
        return jax.random.uniform(k, shape, jnp.float32, -bound, bound)

    # Layer 0: weight_ih_l0 (4H, D), weight_hh_l0 (4H, H), biases (4H,)
    w_ih0 = u(keys[0], (4 * H, D), k_lstm)
    w_hh0 = u(keys[1], (4 * H, H), k_lstm)
    b_ih0 = u(keys[2], (4 * H,), k_lstm)
    b_hh0 = u(keys[3], (4 * H,), k_lstm)
    # Layer 1: weight_ih_l1 (4H, H), weight_hh_l1 (4H, H), biases (4H,)
    w_ih1 = u(keys[4], (4 * H, H), k_lstm)
    w_hh1 = u(keys[5], (4 * H, H), k_lstm)
    b_ih1 = u(keys[6], (4 * H,), k_lstm)
    b_hh1 = u(keys[7], (4 * H,), k_lstm)
    # fc: (O, H), (O,)
    w_fc = u(keys[8], (O, H), k_fc)
    b_fc = u(keys[9], (O,), k_fc)

    return {
        "wih0_T": w_ih0.T,                       # (D, 4H)
        "whh0_T": w_hh0.T,                       # (H, 4H)
        "b0": (b_ih0 + b_hh0).reshape(1, 4 * H),
        "wih1_T": w_ih1.T,                       # (H, 4H)
        "whh1_T": w_hh1.T,                       # (H, 4H)
        "b1": (b_ih1 + b_hh1).reshape(1, 4 * H),
        "wfc_T": w_fc.T,                         # (H, O)
        "bfc": b_fc.reshape(1, O),
    }


def lstm_forward_ref(x, params):
    """Pure-JAX reference mirroring PyTorch semantics (sigmoid-based gates)."""
    B, T, _ = x.shape
    H = HIDDEN_DIM

    def cell(x_t, h, c, wih_T, whh_T, b):
        gates = x_t @ wih_T + h @ whh_T + b
        i = jax.nn.sigmoid(gates[:, 0 * H:1 * H])
        f = jax.nn.sigmoid(gates[:, 1 * H:2 * H])
        g = jnp.tanh(gates[:, 2 * H:3 * H])
        o = jax.nn.sigmoid(gates[:, 3 * H:4 * H])
        c = f * c + i * g
        h = o * jnp.tanh(c)
        return h, c

    h0 = c0 = h1 = c1 = jnp.zeros((B, H), jnp.float32)
    for t in range(T):
        h0, c0 = cell(x[:, t, :], h0, c0,
                      params["wih0_T"], params["whh0_T"], params["b0"])
        h1, c1 = cell(h0, h1, c1,
                      params["wih1_T"], params["whh1_T"], params["b1"])
    return h1 @ params["wfc_T"] + params["bfc"]


if __name__ == "__main__":
    key = jax.random.PRNGKey(0)
    k_param, k_x = jax.random.split(key)

    B, T = 2, 8
    x = jax.random.normal(k_x, (B, T, INPUT_DIM), jnp.float32)
    params = init_params(k_param)

    out = lstm_forward(x, params)
    out = jax.block_until_ready(out)

    ref = lstm_forward_ref(x, params)
    assert out.shape == (B, OUTPUT_DIM)
    # tanh-based sigmoid differs from jax.nn.sigmoid by ~1 ulp; allow small slack.
    assert jnp.allclose(out, ref, atol=1e-4, rtol=1e-4), "mismatch vs reference"

    print("KERNEL_OK")
</pallas_src>

<mosaic_0001>
module attributes {stable_mosaic.version = 11 : i64} {
  func.func @lstm_kernel(%arg0: memref<64x18xf32, #tpu.memory_space<vmem>>, %arg1: memref<18x128xf32, #tpu.memory_space<vmem>>, %arg2: memref<32x128xf32, #tpu.memory_space<vmem>>, %arg3: memref<1x128xf32, #tpu.memory_space<vmem>>, %arg4: memref<32x128xf32, #tpu.memory_space<vmem>>, %arg5: memref<32x128xf32, #tpu.memory_space<vmem>>, %arg6: memref<1x128xf32, #tpu.memory_space<vmem>>, %arg7: memref<32x128xf32, #tpu.memory_space<vmem>>, %arg8: memref<1x128xf32, #tpu.memory_space<vmem>>, %arg9: memref<8x128xf32, #tpu.memory_space<vmem>>) attributes {dimension_semantics = [], scalar_prefetch = 0 : i64, scratch_operands = 0 : i64, tpu.core_type = #tpu.core_type<tc>} {
    %c0 = arith.constant 0 : index
    %c0_0 = arith.constant 0 : index
    %0 = vector.load %arg2[%c0, %c0_0] : memref<32x128xf32, #tpu.memory_space<vmem>>, vector<32x128xf32>
    %c0_1 = arith.constant 0 : index
    %c0_2 = arith.constant 0 : index
    %1 = vector.load %arg4[%c0_1, %c0_2] : memref<32x128xf32, #tpu.memory_space<vmem>>, vector<32x128xf32>
    %c0_3 = arith.constant 0 : index
    %c0_4 = arith.constant 0 : index
    %2 = vector.load %arg5[%c0_3, %c0_4] : memref<32x128xf32, #tpu.memory_space<vmem>>, vector<32x128xf32>
    %c0_5 = arith.constant 0 : index
    %c0_6 = arith.constant 0 : index
    %3 = vector.load %arg6[%c0_5, %c0_6] : memref<1x128xf32, #tpu.memory_space<vmem>>, vector<1x128xf32>
    %4 = vector.shape_cast %3 : vector<1x128xf32> to vector<1x128xf32>
    %5 = vector.broadcast %4 : vector<1x128xf32> to vector<8x128xf32>
    %c0_7 = arith.constant 0 : index
    %c0_8 = arith.constant 0 : index
    %6 = vector.load %arg0[%c0_7, %c0_8] : memref<64x18xf32, #tpu.memory_space<vmem>>, vector<64x18xf32>
    %c0_9 = arith.constant 0 : index
    %c0_10 = arith.constant 0 : index
    %7 = vector.load %arg1[%c0_9, %c0_10] : memref<18x128xf32, #tpu.memory_space<vmem>>, vector<18x128xf32>
    %cst = arith.constant dense<0.000000e+00> : vector<64x128xf32>
    %8 = tpu.matmul %6, %7, %cst {dimension_numbers = #tpu.dot_dimension_numbers<[1], [0], [0], [1], [0, 0, 1, 1], [], []>} : vector<64x18xf32>, vector<18x128xf32>, vector<64x128xf32> -> vector<64x128xf32>
    %c0_11 = arith.constant 0 : index
    %c0_12 = arith.constant 0 : index
    %9 = vector.load %arg3[%c0_11, %c0_12] : memref<1x128xf32, #tpu.memory_space<vmem>>, vector<1x128xf32>
    %10 = vector.broadcast %9 : vector<1x128xf32> to vector<64x128xf32>
    %11 = arith.addf %8, %10 : vector<64x128xf32>
    %cst_13 = arith.constant 0.000000e+00 : f32
    %12 = vector.broadcast %cst_13 : f32 to vector<8x32xf32>
    %cst_14 = arith.constant dense<0.000000e+00> : vector<8x128xf32>
    %13 = tpu.matmul %12, %2, %cst_14 {dimension_numbers = #tpu.dot_dimension_numbers<[1], [0], [0], [1], [0, 0, 1, 1], [], []>} : vector<8x32xf32>, vector<32x128xf32>, vector<8x128xf32> -> vector<8x128xf32>
    %14 = arith.addf %13, %5 : vector<8x128xf32>
    %15 = vector.extract_strided_slice %11 {offsets = [0, 0], sizes = [8, 128], strides = [1, 1]} : vector<64x128xf32> to vector<8x128xf32>
    %cst_15 = arith.constant dense<0.000000e+00> : vector<8x128xf32>
    %16 = tpu.matmul %12, %0, %cst_15 {dimension_numbers = #tpu.dot_dimension_numbers<[1], [0], [0], [1], [0, 0, 1, 1], [], []>} : vector<8x32xf32>, vector<32x128xf32>, vector<8x128xf32> -> vector<8x128xf32>
    %17 = arith.addf %15, %16 : vector<8x128xf32>
    %18 = math.tanh %17 : vector<8x128xf32>
    %cst_16 = arith.constant 5.000000e-01 : f32
    %19 = vector.broadcast %cst_16 : f32 to vector<8x128xf32>
    %20 = arith.mulf %19, %18 : vector<8x128xf32>
    %cst_17 = arith.constant 5.000000e-01 : f32
    %21 = vector.broadcast %cst_17 : f32 to vector<8x128xf32>
    %22 = arith.addf %20, %21 : vector<8x128xf32>
    %23 = vector.extract_strided_slice %22 {offsets = [0, 0], sizes = [8, 32], strides = [1, 1]} : vector<8x128xf32> to vector<8x32xf32>
    %24 = vector.extract_strided_slice %22 {offsets = [0, 32], sizes = [8, 32], strides = [1, 1]} : vector<8x128xf32> to vector<8x32xf32>
    %25 = vector.extract_strided_slice %18 {offsets = [0, 64], sizes = [8, 32], strides = [1, 1]} : vector<8x128xf32> to vector<8x32xf32>
    %26 = vector.extract_strided_slice %22 {offsets = [0, 96], sizes = [8, 32], strides = [1, 1]} : vector<8x128xf32> to vector<8x32xf32>
    %27 = arith.mulf %24, %12 : vector<8x32xf32>
    %28 = arith.mulf %23, %25 : vector<8x32xf32>
    %29 = arith.addf %27, %28 : vector<8x32xf32>
    %30 = math.tanh %29 : vector<8x32xf32>
    %31 = arith.mulf %26, %30 : vector<8x32xf32>
    %cst_18 = arith.constant dense<0.000000e+00> : vector<8x128xf32>
    %32 = tpu.matmul %31, %1, %cst_18 {dimension_numbers = #tpu.dot_dimension_numbers<[1], [0], [0], [1], [0, 0, 1, 1], [], []>} : vector<8x32xf32>, vector<32x128xf32>, vector<8x128xf32> -> vector<8x128xf32>
    %33 = arith.addf %32, %14 : vector<8x128xf32>
    %34 = math.tanh %33 : vector<8x128xf32>
    %cst_19 = arith.constant 5.000000e-01 : f32
    %35 = vector.broadcast %cst_19 : f32 to vector<8x128xf32>
    %36 = arith.mulf %35, %34 : vector<8x128xf32>
    %cst_20 = arith.constant 5.000000e-01 : f32
    %37 = vector.broadcast %cst_20 : f32 to vector<8x128xf32>
    %38 = arith.addf %36, %37 : vector<8x128xf32>
    %39 = vector.extract_strided_slice %38 {offsets = [0, 0], sizes = [8, 32], strides = [1, 1]} : vector<8x128xf32> to vector<8x32xf32>
    %40 = vector.extract_strided_slice %38 {offsets = [0, 32], sizes = [8, 32], strides = [1, 1]} : vector<8x128xf32> to vector<8x32xf32>
    %41 = vector.extract_strided_slice %34 {offsets = [0, 64], sizes = [8, 32], strides = [1, 1]} : vector<8x128xf32> to vector<8x32xf32>
    %42 = vector.extract_strided_slice %38 {offsets = [0, 96], sizes = [8, 32], strides = [1, 1]} : vector<8x128xf32> to vector<8x32xf32>
    %43 = arith.mulf %40, %12 : vector<8x32xf32>
    %44 = arith.mulf %39, %41 : vector<8x32xf32>
    %45 = arith.addf %43, %44 : vector<8x32xf32>
    %46 = math.tanh %45 : vector<8x32xf32>
    %47 = arith.mulf %42, %46 : vector<8x32xf32>
    %cst_21 = arith.constant dense<0.000000e+00> : vector<8x128xf32>
    %48 = tpu.matmul %47, %2, %cst_21 {dimension_numbers = #tpu.dot_dimension_numbers<[1], [0], [0], [1], [0, 0, 1, 1], [], []>} : vector<8x32xf32>, vector<32x128xf32>, vector<8x128xf32> -> vector<8x128xf32>
    %49 = arith.addf %48, %5 : vector<8x128xf32>
    %50 = vector.extract_strided_slice %11 {offsets = [8, 0], sizes = [8, 128], strides = [1, 1]} : vector<64x128xf32> to vector<8x128xf32>
    %cst_22 = arith.constant dense<0.000000e+00> : vector<8x128xf32>
    %51 = tpu.matmul %31, %0, %cst_22 {dimension_numbers = #tpu.dot_dimension_numbers<[1], [0], [0], [1], [0, 0, 1, 1], [], []>} : vector<8x32xf32>, vector<32x128xf32>, vector<8x128xf32> -> vector<8x128xf32>
    %52 = arith.addf %50, %51 : vector<8x128xf32>
    %53 = math.tanh %52 : vector<8x128xf32>
    %cst_23 = arith.constant 5.000000e-01 : f32
    %54 = vector.broadcast %cst_23 : f32 to vector<8x128xf32>
    %55 = arith.mulf %54, %53 : vector<8x128xf32>
    %cst_24 = arith.constant 5.000000e-01 : f32
    %56 = vector.broadcast %cst_24 : f32 to vector<8x128xf32>
    %57 = arith.addf %55, %56 : vector<8x128xf32>
    %58 = vector.extract_strided_slice %57 {offsets = [0, 0], sizes = [8, 32], strides = [1, 1]} : vector<8x128xf32> to vector<8x32xf32>
    %59 = vector.extract_strided_slice %57 {offsets = [0, 32], sizes = [8, 32], strides = [1, 1]} : vector<8x128xf32> to vector<8x32xf32>
    %60 = vector.extract_strided_slice %53 {offsets = [0, 64], sizes = [8, 32], strides = [1, 1]} : vector<8x128xf32> to vector<8x32xf32>
    %61 = vector.extract_strided_slice %57 {offsets = [0, 96], sizes = [8, 32], strides = [1, 1]} : vector<8x128xf32> to vector<8x32xf32>
    %62 = arith.mulf %59, %29 : vector<8x32xf32>
    %63 = arith.mulf %58, %60 : vector<8x32xf32>
    %64 = arith.addf %62, %63 : vector<8x32xf32>
    %65 = math.tanh %64 : vector<8x32xf32>
    %66 = arith.mulf %61, %65 : vector<8x32xf32>
    %cst_25 = arith.constant dense<0.000000e+00> : vector<8x128xf32>
    %67 = tpu.matmul %66, %1, %cst_25 {dimension_numbers = #tpu.dot_dimension_numbers<[1], [0], [0], [1], [0, 0, 1, 1], [], []>} : vector<8x32xf32>, vector<32x128xf32>, vector<8x128xf32> -> vector<8x128xf32>
    %68 = arith.addf %67, %49 : vector<8x128xf32>
    %69 = math.tanh %68 : vector<8x128xf32>
    %cst_26 = arith.constant 5.000000e-01 : f32
    %70 = vector.broadcast %cst_26 : f32 to vector<8x128xf32>
    %71 = arith.mulf %70, %69 : vector<8x128xf32>
    %cst_27 = arith.constant 5.000000e-01 : f32
    %72 = vector.broadcast %cst_27 : f32 to vector<8x128xf32>
    %73 = arith.addf %71, %72 : vector<8x128xf32>
    %74 = vector.extract_strided_slice %73 {offsets = [0, 0], sizes = [8, 32], strides = [1, 1]} : vector<8x128xf32> to vector<8x32xf32>
    %75 = vector.extract_strided_slice %73 {offsets = [0, 32], sizes = [8, 32], strides = [1, 1]} : vector<8x128xf32> to vector<8x32xf32>
    %76 = vector.extract_strided_slice %69 {offsets = [0, 64], sizes = [8, 32], strides = [1, 1]} : vector<8x128xf32> to vector<8x32xf32>
    %77 = vector.extract_strided_slice %73 {offsets = [0, 96], sizes = [8, 32], strides = [1, 1]} : vector<8x128xf32> to vector<8x32xf32>
    %78 = arith.mulf %75, %45 : vector<8x32xf32>
    %79 = arith.mulf %74, %76 : vector<8x32xf32>
    %80 = arith.addf %78, %79 : vector<8x32xf32>
    %81 = math.tanh %80 : vector<8x32xf32>
    %82 = arith.mulf %77, %81 : vector<8x32xf32>
    %cst_28 = arith.constant dense<0.000000e+00> : vector<8x128xf32>
    %83 = tpu.matmul %82, %2, %cst_28 {dimension_numbers = #tpu.dot_dimension_numbers<[1], [0], [0], [1], [0, 0, 1, 1], [], []>} : vector<8x32xf32>, vector<32x128xf32>, vector<8x128xf32> -> vector<8x128xf32>
    %84 = arith.addf %83, %5 : vector<8x128xf32>
    %85 = vector.extract_strided_slice %11 {offsets = [16, 0], sizes = [8, 128], strides = [1, 1]} : vector<64x128xf32> to vector<8x128xf32>
    %cst_29 = arith.constant dense<0.000000e+00> : vector<8x128xf32>
    %86 = tpu.matmul %66, %0, %cst_29 {dimension_numbers = #tpu.dot_dimension_numbers<[1], [0], [0], [1], [0, 0, 1, 1], [], []>} : vector<8x32xf32>, vector<32x128xf32>, vector<8x128xf32> -> vector<8x128xf32>
    %87 = arith.addf %85, %86 : vector<8x128xf32>
    %88 = math.tanh %87 : vector<8x128xf32>
    %cst_30 = arith.constant 5.000000e-01 : f32
    %89 = vector.broadcast %cst_30 : f32 to vector<8x128xf32>
    %90 = arith.mulf %89, %88 : vector<8x128xf32>
    %cst_31 = arith.constant 5.000000e-01 : f32
    %91 = vector.broadcast %cst_31 : f32 to vector<8x128xf32>
    %92 = arith.addf %90, %91 : vector<8x128xf32>
    %93 = vector.extract_strided_slice %92 {offsets = [0, 0], sizes = [8, 32], strides = [1, 1]} : vector<8x128xf32> to vector<8x32xf32>
    %94 = vector.extract_strided_slice %92 {offsets = [0, 32], sizes = [8, 32], strides = [1, 1]} : vector<8x128xf32> to vector<8x32xf32>
    %95 = vector.extract_strided_slice %88 {offsets = [0, 64], sizes = [8, 32], strides = [1, 1]} : vector<8x128xf32> to vector<8x32xf32>
    %96 = vector.extract_strided_slice %92 {offsets = [0, 96], sizes = [8, 32], strides = [1, 1]} : vector<8x128xf32> to vector<8x32xf32>
    %97 = arith.mulf %94, %64 : vector<8x32xf32>
    %98 = arith.mulf %93, %95 : vector<8x32xf32>
    %99 = arith.addf %97, %98 : vector<8x32xf32>
    %100 = math.tanh %99 : vector<8x32xf32>
    %101 = arith.mulf %96, %100 : vector<8x32xf32>
    %cst_32 = arith.constant dense<0.000000e+00> : vector<8x128xf32>
    %102 = tpu.matmul %101, %1, %cst_32 {dimension_numbers = #tpu.dot_dimension_numbers<[1], [0], [0], [1], [0, 0, 1, 1], [], []>} : vector<8x32xf32>, vector<32x128xf32>, vector<8x128xf32> -> vector<8x128xf32>
    %103 = arith.addf %102, %84 : vector<8x128xf32>
    %104 = math.tanh %103 : vector<8x128xf32>
    %cst_33 = arith.constant 5.000000e-01 : f32
    %105 = vector.broadcast %cst_33 : f32 to vector<8x128xf32>
    %106 = arith.mulf %105, %104 : vector<8x128xf32>
    %cst_34 = arith.constant 5.000000e-01 : f32
    %107 = vector.broadcast %cst_34 : f32 to vector<8x128xf32>
    %108 = arith.addf %106, %107 : vector<8x128xf32>
    %109 = vector.extract_strided_slice %108 {offsets = [0, 0], sizes = [8, 32], strides = [1, 1]} : vector<8x128xf32> to vector<8x32xf32>
    %110 = vector.extract_strided_slice %108 {offsets = [0, 32], sizes = [8, 32], strides = [1, 1]} : vector<8x128xf32> to vector<8x32xf32>
    %111 = vector.extract_strided_slice %104 {offsets = [0, 64], sizes = [8, 32], strides = [1, 1]} : vector<8x128xf32> to vector<8x32xf32>
    %112 = vector.extract_strided_slice %108 {offsets = [0, 96], sizes = [8, 32], strides = [1, 1]} : vector<8x128xf32> to vector<8x32xf32>
    %113 = arith.mulf %110, %80 : vector<8x32xf32>
    %114 = arith.mulf %109, %111 : vector<8x32xf32>
    %115 = arith.addf %113, %114 : vector<8x32xf32>
    %116 = math.tanh %115 : vector<8x32xf32>
    %117 = arith.mulf %112, %116 : vector<8x32xf32>
    %cst_35 = arith.constant dense<0.000000e+00> : vector<8x128xf32>
    %118 = tpu.matmul %117, %2, %cst_35 {dimension_numbers = #tpu.dot_dimension_numbers<[1], [0], [0], [1], [0, 0, 1, 1], [], []>} : vector<8x32xf32>, vector<32x128xf32>, vector<8x128xf32> -> vector<8x128xf32>
    %119 = arith.addf %118, %5 : vector<8x128xf32>
    %120 = vector.extract_strided_slice %11 {offsets = [24, 0], sizes = [8, 128], strides = [1, 1]} : vector<64x128xf32> to vector<8x128xf32>
    %cst_36 = arith.constant dense<0.000000e+00> : vector<8x128xf32>
    %121 = tpu.matmul %101, %0, %cst_36 {dimension_numbers = #tpu.dot_dimension_numbers<[1], [0], [0], [1], [0, 0, 1, 1], [], []>} : vector<8x32xf32>, vector<32x128xf32>, vector<8x128xf32> -> vector<8x128xf32>
    %122 = arith.addf %120, %121 : vector<8x128xf32>
    %123 = math.tanh %122 : vector<8x128xf32>
    %cst_37 = arith.constant 5.000000e-01 : f32
    %124 = vector.broadcast %cst_37 : f32 to vector<8x128xf32>
    %125 = arith.mulf %124, %123 : vector<8x128xf32>
    %cst_38 = arith.constant 5.000000e-01 : f32
    %126 = vector.broadcast %cst_38 : f32 to vector<8x128xf32>
    %127 = arith.addf %125, %126 : vector<8x128xf32>
    %128 = vector.extract_strided_slice %127 {offsets = [0, 0], sizes = [8, 32], strides = [1, 1]} : vector<8x128xf32> to vector<8x32xf32>
    %129 = vector.extract_strided_slice %127 {offsets = [0, 32], sizes = [8, 32], strides = [1, 1]} : vector<8x128xf32> to vector<8x32xf32>
    %130 = vector.extract_strided_slice %123 {offsets = [0, 64], sizes = [8, 32], strides = [1, 1]} : vector<8x128xf32> to vector<8x32xf32>
    %131 = vector.extract_strided_slice %127 {offsets = [0, 96], sizes = [8, 32], strides = [1, 1]} : vector<8x128xf32> to vector<8x32xf32>
    %132 = arith.mulf %129, %99 : vector<8x32xf32>
    %133 = arith.mulf %128, %130 : vector<8x32xf32>
    %134 = arith.addf %132, %133 : vector<8x32xf32>
    %135 = math.tanh %134 : vector<8x32xf32>
    %136 = arith.mulf %131, %135 : vector<8x32xf32>
    %cst_39 = arith.constant dense<0.000000e+00> : vector<8x128xf32>
    %137 = tpu.matmul %136, %1, %cst_39 {dimension_numbers = #tpu.dot_dimension_numbers<[1], [0], [0], [1], [0, 0, 1, 1], [], []>} : vector<8x32xf32>, vector<32x128xf32>, vector<8x128xf32> -> vector<8x128xf32>
    %138 = arith.addf %137, %119 : vector<8x128xf32>
    %139 = math.tanh %138 : vector<8x128xf32>
    %cst_40 = arith.constant 5.000000e-01 : f32
    %140 = vector.broadcast %cst_40 : f32 to vector<8x128xf32>
    %141 = arith.mulf %140, %139 : vector<8x128xf32>
    %cst_41 = arith.constant 5.000000e-01 : f32
    %142 = vector.broadcast %cst_41 : f32 to vector<8x128xf32>
    %143 = arith.addf %141, %142 : vector<8x128xf32>
    %144 = vector.extract_strided_slice %143 {offsets = [0, 0], sizes = [8, 32], strides = [1, 1]} : vector<8x128xf32> to vector<8x32xf32>
    %145 = vector.extract_strided_slice %143 {offsets = [0, 32], sizes = [8, 32], strides = [1, 1]} : vector<8x128xf32> to vector<8x32xf32>
    %146 = vector.extract_strided_slice %139 {offsets = [0, 64], sizes = [8, 32], strides = [1, 1]} : vector<8x128xf32> to vector<8x32xf32>
    %147 = vector.extract_strided_slice %143 {offsets = [0, 96], sizes = [8, 32], strides = [1, 1]} : vector<8x128xf32> to vector<8x32xf32>
    %148 = arith.mulf %145, %115 : vector<8x32xf32>
    %149 = arith.mulf %144, %146 : vector<8x32xf32>
    %150 = arith.addf %148, %149 : vector<8x32xf32>
    %151 = math.tanh %150 : vector<8x32xf32>
    %152 = arith.mulf %147, %151 : vector<8x32xf32>
    %cst_42 = arith.constant dense<0.000000e+00> : vector<8x128xf32>
    %153 = tpu.matmul %152, %2, %cst_42 {dimension_numbers = #tpu.dot_dimension_numbers<[1], [0], [0], [1], [0, 0, 1, 1], [], []>} : vector<8x32xf32>, vector<32x128xf32>, vector<8x128xf32> -> vector<8x128xf32>
    %154 = arith.addf %153, %5 : vector<8x128xf32>
    %155 = vector.extract_strided_slice %11 {offsets = [32, 0], sizes = [8, 128], strides = [1, 1]} : vector<64x128xf32> to vector<8x128xf32>
    %cst_43 = arith.constant dense<0.000000e+00> : vector<8x128xf32>
    %156 = tpu.matmul %136, %0, %cst_43 {dimension_numbers = #tpu.dot_dimension_numbers<[1], [0], [0], [1], [0, 0, 1, 1], [], []>} : vector<8x32xf32>, vector<32x128xf32>, vector<8x128xf32> -> vector<8x128xf32>
    %157 = arith.addf %155, %156 : vector<8x128xf32>
    %158 = math.tanh %157 : vector<8x128xf32>
    %cst_44 = arith.constant 5.000000e-01 : f32
    %159 = vector.broadcast %cst_44 : f32 to vector<8x128xf32>
    %160 = arith.mulf %159, %158 : vector<8x128xf32>
    %cst_45 = arith.constant 5.000000e-01 : f32
    %161 = vector.broadcast %cst_45 : f32 to vector<8x128xf32>
    %162 = arith.addf %160, %161 : vector<8x128xf32>
    %163 = vector.extract_strided_slice %162 {offsets = [0, 0], sizes = [8, 32], strides = [1, 1]} : vector<8x128xf32> to vector<8x32xf32>
    %164 = vector.extract_strided_slice %162 {offsets = [0, 32], sizes = [8, 32], strides = [1, 1]} : vector<8x128xf32> to vector<8x32xf32>
    %165 = vector.extract_strided_slice %158 {offsets = [0, 64], sizes = [8, 32], strides = [1, 1]} : vector<8x128xf32> to vector<8x32xf32>
    %166 = vector.extract_strided_slice %162 {offsets = [0, 96], sizes = [8, 32], strides = [1, 1]} : vector<8x128xf32> to vector<8x32xf32>
    %167 = arith.mulf %164, %134 : vector<8x32xf32>
    %168 = arith.mulf %163, %165 : vector<8x32xf32>
    %169 = arith.addf %167, %168 : vector<8x32xf32>
    %170 = math.tanh %169 : vector<8x32xf32>
    %171 = arith.mulf %166, %170 : vector<8x32xf32>
    %cst_46 = arith.constant dense<0.000000e+00> : vector<8x128xf32>
    %172 = tpu.matmul %171, %1, %cst_46 {dimension_numbers = #tpu.dot_dimension_numbers<[1], [0], [0], [1], [0, 0, 1, 1], [], []>} : vector<8x32xf32>, vector<32x128xf32>, vector<8x128xf32> -> vector<8x128xf32>
    %173 = arith.addf %172, %154 : vector<8x128xf32>
    %174 = math.tanh %173 : vector<8x128xf32>
    %cst_47 = arith.constant 5.000000e-01 : f32
    %175 = vector.broadcast %cst_47 : f32 to vector<8x128xf32>
    %176 = arith.mulf %175, %174 : vector<8x128xf32>
    %cst_48 = arith.constant 5.000000e-01 : f32
    %177 = vector.broadcast %cst_48 : f32 to vector<8x128xf32>
    %178 = arith.addf %176, %177 : vector<8x128xf32>
    %179 = vector.extract_strided_slice %178 {offsets = [0, 0], sizes = [8, 32], strides = [1, 1]} : vector<8x128xf32> to vector<8x32xf32>
    %180 = vector.extract_strided_slice %178 {offsets = [0, 32], sizes = [8, 32], strides = [1, 1]} : vector<8x128xf32> to vector<8x32xf32>
    %181 = vector.extract_strided_slice %174 {offsets = [0, 64], sizes = [8, 32], strides = [1, 1]} : vector<8x128xf32> to vector<8x32xf32>
    %182 = vector.extract_strided_slice %178 {offsets = [0, 96], sizes = [8, 32], strides = [1, 1]} : vector<8x128xf32> to vector<8x32xf32>
    %183 = arith.mulf %180, %150 : vector<8x32xf32>
    %184 = arith.mulf %179, %181 : vector<8x32xf32>
    %185 = arith.addf %183, %184 : vector<8x32xf32>
    %186 = math.tanh %185 : vector<8x32xf32>
    %187 = arith.mulf %182, %186 : vector<8x32xf32>
    %cst_49 = arith.constant dense<0.000000e+00> : vector<8x128xf32>
    %188 = tpu.matmul %187, %2, %cst_49 {dimension_numbers = #tpu.dot_dimension_numbers<[1], [0], [0], [1], [0, 0, 1, 1], [], []>} : vector<8x32xf32>, vector<32x128xf32>, vector<8x128xf32> -> vector<8x128xf32>
    %189 = arith.addf %188, %5 : vector<8x128xf32>
    %190 = vector.extract_strided_slice %11 {offsets = [40, 0], sizes = [8, 128], strides = [1, 1]} : vector<64x128xf32> to vector<8x128xf32>
    %cst_50 = arith.constant dense<0.000000e+00> : vector<8x128xf32>
    %191 = tpu.matmul %171, %0, %cst_50 {dimension_numbers = #tpu.dot_dimension_numbers<[1], [0], [0], [1], [0, 0, 1, 1], [], []>} : vector<8x32xf32>, vector<32x128xf32>, vector<8x128xf32> -> vector<8x128xf32>
    %192 = arith.addf %190, %191 : vector<8x128xf32>
    %193 = math.tanh %192 : vector<8x128xf32>
    %cst_51 = arith.constant 5.000000e-01 : f32
    %194 = vector.broadcast %cst_51 : f32 to vector<8x128xf32>
    %195 = arith.mulf %194, %193 : vector<8x128xf32>
    %cst_52 = arith.constant 5.000000e-01 : f32
    %196 = vector.broadcast %cst_52 : f32 to vector<8x128xf32>
    %197 = arith.addf %195, %196 : vector<8x128xf32>
    %198 = vector.extract_strided_slice %197 {offsets = [0, 0], sizes = [8, 32], strides = [1, 1]} : vector<8x128xf32> to vector<8x32xf32>
    %199 = vector.extract_strided_slice %197 {offsets = [0, 32], sizes = [8, 32], strides = [1, 1]} : vector<8x128xf32> to vector<8x32xf32>
    %200 = vector.extract_strided_slice %193 {offsets = [0, 64], sizes = [8, 32], strides = [1, 1]} : vector<8x128xf32> to vector<8x32xf32>
    %201 = vector.extract_strided_slice %197 {offsets = [0, 96], sizes = [8, 32], strides = [1, 1]} : vector<8x128xf32> to vector<8x32xf32>
    %202 = arith.mulf %199, %169 : vector<8x32xf32>
    %203 = arith.mulf %198, %200 : vector<8x32xf32>
    %204 = arith.addf %202, %203 : vector<8x32xf32>
    %205 = math.tanh %204 : vector<8x32xf32>
    %206 = arith.mulf %201, %205 : vector<8x32xf32>
    %cst_53 = arith.constant dense<0.000000e+00> : vector<8x128xf32>
    %207 = tpu.matmul %206, %1, %cst_53 {dimension_numbers = #tpu.dot_dimension_numbers<[1], [0], [0], [1], [0, 0, 1, 1], [], []>} : vector<8x32xf32>, vector<32x128xf32>, vector<8x128xf32> -> vector<8x128xf32>
    %208 = arith.addf %207, %189 : vector<8x128xf32>
    %209 = math.tanh %208 : vector<8x128xf32>
    %cst_54 = arith.constant 5.000000e-01 : f32
    %210 = vector.broadcast %cst_54 : f32 to vector<8x128xf32>
    %211 = arith.mulf %210, %209 : vector<8x128xf32>
    %cst_55 = arith.constant 5.000000e-01 : f32
    %212 = vector.broadcast %cst_55 : f32 to vector<8x128xf32>
    %213 = arith.addf %211, %212 : vector<8x128xf32>
    %214 = vector.extract_strided_slice %213 {offsets = [0, 0], sizes = [8, 32], strides = [1, 1]} : vector<8x128xf32> to vector<8x32xf32>
    %215 = vector.extract_strided_slice %213 {offsets = [0, 32], sizes = [8, 32], strides = [1, 1]} : vector<8x128xf32> to vector<8x32xf32>
    %216 = vector.extract_strided_slice %209 {offsets = [0, 64], sizes = [8, 32], strides = [1, 1]} : vector<8x128xf32> to vector<8x32xf32>
    %217 = vector.extract_strided_slice %213 {offsets = [0, 96], sizes = [8, 32], strides = [1, 1]} : vector<8x128xf32> to vector<8x32xf32>
    %218 = arith.mulf %215, %185 : vector<8x32xf32>
    %219 = arith.mulf %214, %216 : vector<8x32xf32>
    %220 = arith.addf %218, %219 : vector<8x32xf32>
    %221 = math.tanh %220 : vector<8x32xf32>
    %222 = arith.mulf %217, %221 : vector<8x32xf32>
    %cst_56 = arith.constant dense<0.000000e+00> : vector<8x128xf32>
    %223 = tpu.matmul %222, %2, %cst_56 {dimension_numbers = #tpu.dot_dimension_numbers<[1], [0], [0], [1], [0, 0, 1, 1], [], []>} : vector<8x32xf32>, vector<32x128xf32>, vector<8x128xf32> -> vector<8x128xf32>
    %224 = arith.addf %223, %5 : vector<8x128xf32>
    %225 = vector.extract_strided_slice %11 {offsets = [48, 0], sizes = [8, 128], strides = [1, 1]} : vector<64x128xf32> to vector<8x128xf32>
    %cst_57 = arith.constant dense<0.000000e+00> : vector<8x128xf32>
    %226 = tpu.matmul %206, %0, %cst_57 {dimension_numbers = #tpu.dot_dimension_numbers<[1], [0], [0], [1], [0, 0, 1, 1], [], []>} : vector<8x32xf32>, vector<32x128xf32>, vector<8x128xf32> -> vector<8x128xf32>
    %227 = arith.addf %225, %226 : vector<8x128xf32>
    %228 = math.tanh %227 : vector<8x128xf32>
    %cst_58 = arith.constant 5.000000e-01 : f32
    %229 = vector.broadcast %cst_58 : f32 to vector<8x128xf32>
    %230 = arith.mulf %229, %228 : vector<8x128xf32>
    %cst_59 = arith.constant 5.000000e-01 : f32
    %231 = vector.broadcast %cst_59 : f32 to vector<8x128xf32>
    %232 = arith.addf %230, %231 : vector<8x128xf32>
    %233 = vector.extract_strided_slice %232 {offsets = [0, 0], sizes = [8, 32], strides = [1, 1]} : vector<8x128xf32> to vector<8x32xf32>
    %234 = vector.extract_strided_slice %232 {offsets = [0, 32], sizes = [8, 32], strides = [1, 1]} : vector<8x128xf32> to vector<8x32xf32>
    %235 = vector.extract_strided_slice %228 {offsets = [0, 64], sizes = [8, 32], strides = [1, 1]} : vector<8x128xf32> to vector<8x32xf32>
    %236 = vector.extract_strided_slice %232 {offsets = [0, 96], sizes = [8, 32], strides = [1, 1]} : vector<8x128xf32> to vector<8x32xf32>
    %237 = arith.mulf %234, %204 : vector<8x32xf32>
    %238 = arith.mulf %233, %235 : vector<8x32xf32>
    %239 = arith.addf %237, %238 : vector<8x32xf32>
    %240 = math.tanh %239 : vector<8x32xf32>
    %241 = arith.mulf %236, %240 : vector<8x32xf32>
    %cst_60 = arith.constant dense<0.000000e+00> : vector<8x128xf32>
    %242 = tpu.matmul %241, %1, %cst_60 {dimension_numbers = #tpu.dot_dimension_numbers<[1], [0], [0], [1], [0, 0, 1, 1], [], []>} : vector<8x32xf32>, vector<32x128xf32>, vector<8x128xf32> -> vector<8x128xf32>
    %243 = arith.addf %242, %224 : vector<8x128xf32>
    %244 = math.tanh %243 : vector<8x128xf32>
    %cst_61 = arith.constant 5.000000e-01 : f32
    %245 = vector.broadcast %cst_61 : f32 to vector<8x128xf32>
    %246 = arith.mulf %245, %244 : vector<8x128xf32>
    %cst_62 = arith.constant 5.000000e-01 : f32
    %247 = vector.broadcast %cst_62 : f32 to vector<8x128xf32>
    %248 = arith.addf %246, %247 : vector<8x128xf32>
    %249 = vector.extract_strided_slice %248 {offsets = [0, 0], sizes = [8, 32], strides = [1, 1]} : vector<8x128xf32> to vector<8x32xf32>
    %250 = vector.extract_strided_slice %248 {offsets = [0, 32], sizes = [8, 32], strides = [1, 1]} : vector<8x128xf32> to vector<8x32xf32>
    %251 = vector.extract_strided_slice %244 {offsets = [0, 64], sizes = [8, 32], strides = [1, 1]} : vector<8x128xf32> to vector<8x32xf32>
    %252 = vector.extract_strided_slice %248 {offsets = [0, 96], sizes = [8, 32], strides = [1, 1]} : vector<8x128xf32> to vector<8x32xf32>
    %253 = arith.mulf %250, %220 : vector<8x32xf32>
    %254 = arith.mulf %249, %251 : vector<8x32xf32>
    %255 = arith.addf %253, %254 : vector<8x32xf32>
    %256 = math.tanh %255 : vector<8x32xf32>
    %257 = arith.mulf %252, %256 : vector<8x32xf32>
    %cst_63 = arith.constant dense<0.000000e+00> : vector<8x128xf32>
    %258 = tpu.matmul %257, %2, %cst_63 {dimension_numbers = #tpu.dot_dimension_numbers<[1], [0], [0], [1], [0, 0, 1, 1], [], []>} : vector<8x32xf32>, vector<32x128xf32>, vector<8x128xf32> -> vector<8x128xf32>
    %259 = arith.addf %258, %5 : vector<8x128xf32>
    %260 = vector.extract_strided_slice %11 {offsets = [56, 0], sizes = [8, 128], strides = [1, 1]} : vector<64x128xf32> to vector<8x128xf32>
    %cst_64 = arith.constant dense<0.000000e+00> : vector<8x128xf32>
    %261 = tpu.matmul %241, %0, %cst_64 {dimension_numbers = #tpu.dot_dimension_numbers<[1], [0], [0], [1], [0, 0, 1, 1], [], []>} : vector<8x32xf32>, vector<32x128xf32>, vector<8x128xf32> -> vector<8x128xf32>
    %262 = arith.addf %260, %261 : vector<8x128xf32>
    %263 = math.tanh %262 : vector<8x128xf32>
    %cst_65 = arith.constant 5.000000e-01 : f32
    %264 = vector.broadcast %cst_65 : f32 to vector<8x128xf32>
    %265 = arith.mulf %264, %263 : vector<8x128xf32>
    %cst_66 = arith.constant 5.000000e-01 : f32
    %266 = vector.broadcast %cst_66 : f32 to vector<8x128xf32>
    %267 = arith.addf %265, %266 : vector<8x128xf32>
    %268 = vector.extract_strided_slice %267 {offsets = [0, 0], sizes = [8, 32], strides = [1, 1]} : vector<8x128xf32> to vector<8x32xf32>
    %269 = vector.extract_strided_slice %267 {offsets = [0, 32], sizes = [8, 32], strides = [1, 1]} : vector<8x128xf32> to vector<8x32xf32>
    %270 = vector.extract_strided_slice %263 {offsets = [0, 64], sizes = [8, 32], strides = [1, 1]} : vector<8x128xf32> to vector<8x32xf32>
    %271 = vector.extract_strided_slice %267 {offsets = [0, 96], sizes = [8, 32], strides = [1, 1]} : vector<8x128xf32> to vector<8x32xf32>
    %272 = arith.mulf %269, %239 : vector<8x32xf32>
    %273 = arith.mulf %268, %270 : vector<8x32xf32>
    %274 = arith.addf %272, %273 : vector<8x32xf32>
    %275 = math.tanh %274 : vector<8x32xf32>
    %276 = arith.mulf %271, %275 : vector<8x32xf32>
    %cst_67 = arith.constant dense<0.000000e+00> : vector<8x128xf32>
    %277 = tpu.matmul %276, %1, %cst_67 {dimension_numbers = #tpu.dot_dimension_numbers<[1], [0], [0], [1], [0, 0, 1, 1], [], []>} : vector<8x32xf32>, vector<32x128xf32>, vector<8x128xf32> -> vector<8x128xf32>
    %278 = arith.addf %277, %259 : vector<8x128xf32>
    %279 = math.tanh %278 : vector<8x128xf32>
    %cst_68 = arith.constant 5.000000e-01 : f32
    %280 = vector.broadcast %cst_68 : f32 to vector<8x128xf32>
    %281 = arith.mulf %280, %279 : vector<8x128xf32>
    %cst_69 = arith.constant 5.000000e-01 : f32
    %282 = vector.broadcast %cst_69 : f32 to vector<8x128xf32>
    %283 = arith.addf %281, %282 : vector<8x128xf32>
    %284 = vector.extract_strided_slice %283 {offsets = [0, 0], sizes = [8, 32], strides = [1, 1]} : vector<8x128xf32> to vector<8x32xf32>
    %285 = vector.extract_strided_slice %283 {offsets = [0, 32], sizes = [8, 32], strides = [1, 1]} : vector<8x128xf32> to vector<8x32xf32>
    %286 = vector.extract_strided_slice %279 {offsets = [0, 64], sizes = [8, 32], strides = [1, 1]} : vector<8x128xf32> to vector<8x32xf32>
    %287 = vector.extract_strided_slice %283 {offsets = [0, 96], sizes = [8, 32], strides = [1, 1]} : vector<8x128xf32> to vector<8x32xf32>
    %288 = arith.mulf %285, %255 : vector<8x32xf32>
    %289 = arith.mulf %284, %286 : vector<8x32xf32>
    %290 = arith.addf %288, %289 : vector<8x32xf32>
    %291 = math.tanh %290 : vector<8x32xf32>
    %292 = arith.mulf %287, %291 : vector<8x32xf32>
    %c0_70 = arith.constant 0 : index
    %c0_71 = arith.constant 0 : index
    %293 = vector.load %arg7[%c0_70, %c0_71] : memref<32x128xf32, #tpu.memory_space<vmem>>, vector<32x128xf32>
    %cst_72 = arith.constant dense<0.000000e+00> : vector<8x128xf32>
    %294 = tpu.matmul %292, %293, %cst_72 {dimension_numbers = #tpu.dot_dimension_numbers<[1], [0], [0], [1], [0, 0, 1, 1], [], []>} : vector<8x32xf32>, vector<32x128xf32>, vector<8x128xf32> -> vector<8x128xf32>
    %c0_73 = arith.constant 0 : index
    %c0_74 = arith.constant 0 : index
    %295 = vector.load %arg8[%c0_73, %c0_74] : memref<1x128xf32, #tpu.memory_space<vmem>>, vector<1x128xf32>
    %296 = vector.broadcast %295 : vector<1x128xf32> to vector<8x128xf32>
    %297 = arith.addf %294, %296 : vector<8x128xf32>
    %c0_75 = arith.constant 0 : index
    %c0_76 = arith.constant 0 : index
    %298 = vector.load %arg9[%c0_75, %c0_76] : memref<8x128xf32, #tpu.memory_space<vmem>>, vector<8x128xf32>
    tpu.vector_store %arg9[%c0_75, %c0_76], %297 {strides = array<i32>} : memref<8x128xf32, #tpu.memory_space<vmem>>, vector<8x128xf32>,
    return
  }
}

</mosaic_0001>

<bundles_post_ra>
// kernel: tpu_custom_call.1
= control target key start
LH: loop header
LB: loop body
LE: loop exit
PB: predicated region body
PF: predicated region fallthrough
CT: control target
= control target key end

     0   :  { %14 = vsyncpa [#allocation3], 0  ;;  %s3681_s0 = inlined_call_operand.vmem [shape: f32[64,18], index: 0, kind: input, shape index: {}]   ;;  %s3682_s1 = inlined_call_operand.hbm [shape: f32[18,128], index: 1, kind: input, shape index: {}]   ;;  %s3683_s2 = inlined_call_operand.vmem [shape: f32[32,128], index: 2, kind: input, shape index: {}]   ;;  %s3684_s3 = inlined_call_operand.vmem [shape: f32[1,128], index: 3, kind: input, shape index: {}]   ;;  %s3685_s4 = inlined_call_operand.vmem [shape: f32[32,128], index: 4, kind: input, shape index: {}]   ;;  %s3686_s5 = inlined_call_operand.vmem [shape: f32[32,128], index: 5, kind: input, shape index: {}]   ;;  %s3687_s6 = inlined_call_operand.vmem [shape: f32[1,128], index: 6, kind: input, shape index: {}]   ;;  %s3688_s7 = inlined_call_operand.hbm [shape: f32[32,128], index: 7, kind: input, shape index: {}]   ;;  %s3689_s8 = inlined_call_operand.vmem [shape: f32[1,128], index: 8, kind: input, shape index: {}]   ;;  %s3690_s9 = inlined_call_operand.hbm [shape: f32[8,128], index: 9, kind: output, shape index: {}]  }
   0x1   :  { %15 = vsyncpa [#allocation6], 0 }
   0x2   :  { %16 = vsyncpa [#allocation4], 0  ;;  %s3210_s30 = smov [#allocation2]   ;;  %s3138_s13 = scalar_lea.hbm %s3682_s1, 384 }
   0x3   :  { %s24_s10 = sshll.u32 %s3210_s30, 4  ;;  %p3139_p0 = scmp.ne.s32.totalorder %s3682_s1, %s3138_s13  ;;  %s25_s10 = int_to_ptr.vmem [resolvable:$true] %s24_s10 }
   0x4   :  { %p3142_p1 = scmp.lt.u32.totalorder %s3138_s13, %s3682_s1 }
   0x6   :  { %p3144_p2 = pnand %p3142_p1, %p3139_p0 }
   0x8   :  { %3147 = shalt.err (!%p3144_p2)
}
   0x9   :  { %s3148_s18 = scalar_lea.vmem %s25_s10, 384  ;;  %p3153_p4 = scmp.lt.s32.totalorder %s25_s10, %s25_s10 }
   0xa   :  { %p3149_p3 = scmp.ne.s32.totalorder %s25_s10, %s3148_s18  ;;  %p3154_p5 = scmp.lt.s32.totalorder %s3148_s18, %s3148_s18 }
   0xc   :  { %p3155_p6 = por %p3154_p5, %p3153_p4 }
   0xe   :  { %p3156_p7 = pnand %p3155_p6, %p3149_p3 }
  0x10   :  { %3159 = shalt.err (!%p3156_p7)
}
  0x11   :  { %s3211_s19 = smov 128   ;;  %s3212_s20 = smov 8  }
  0x12   :  { %30 = dma.hbm_to_vmem [thread:$0]  %s3682_s1, 384, %s25_s10, [#allocation3], %s3211_s19, %s3211_s19, %s3212_s20  }
  0x13   :  { %s3213_s23 = smov [#allocation5]   ;;  %s3160_s27 = scalar_lea.hbm %s3688_s7, 512 }
  0x14   :  { %s46_s24 = sshll.u32 %s3213_s23, 4  ;;  %p3161_p8 = scmp.ne.s32.totalorder %s3688_s7, %s3160_s27  ;;  %s47_s24 = int_to_ptr.vmem [resolvable:$true] %s46_s24 }
  0x15   :  { %p3164_p9 = scmp.lt.u32.totalorder %s3160_s27, %s3688_s7 }
  0x17   :  { %p3166_p10 = pnand %p3164_p9, %p3161_p8 }
  0x19   :  { %3169 = shalt.err (!%p3166_p10)
}
  0x1a   :  { %s3170_s12 = scalar_lea.vmem %s47_s24, 512  ;;  %p3175_p12 = scmp.lt.s32.totalorder %s47_s24, %s47_s24 }
  0x1b   :  { %p3171_p11 = scmp.ne.s32.totalorder %s47_s24, %s3170_s12  ;;  %p3176_p13 = scmp.lt.s32.totalorder %s3170_s12, %s3170_s12 }
  0x1d   :  { %p3177_p0 = por %p3176_p13, %p3175_p12 }
  0x1f   :  { %p3178_p1 = pnand %p3177_p0, %p3171_p11 }
  0x21   :  { %3181 = shalt.err (!%p3178_p1)
}
  0x22   :  { %52 = dma.hbm_to_vmem [thread:$0]  %s3688_s7, 512, %s47_s24, [#allocation6], %s3211_s19, %s3211_s19, %s3212_s20  }
  0x23   :  { %3204 = dma.done.wait [#allocation3], 384  }
  0x24   :  { %3205 = vsyncadd [#allocation3], 4294966912 }
  0x25   :  { %3206 = dma.done.wait [#allocation6], 512  }
  0x26   :  { %3207 = vsyncadd [#allocation6], 4294966784  ;;  %v3214_v0 = vmov 0.0|0.0   ;;  %vm3215_vm0 = vmmov 0   ;;  %v3216_v1 = vmov 0.0   ;;  %v69_v2 = vld [vmem:[%s3686_s5] sm:$0xff] }
  0x27   :  { %2890 = vmatprep.subr.bf16.mxu1 %v3214_v0  ;;  %2619 = vmatprep.mubr.msk.f32.mxu1 %vm3215_vm0, %v3216_v1  ;;  %v70_v3 = vld [vmem:[%s3686_s5 + $0x8] sm:$0xff]  ;;  %v71_v4 = vld [vmem:[%s3686_s5 + $0x10] sm:$0xff]  ;;  %v72_v6 = vld [vmem:[%s3686_s5 + $0x18] sm:$0xff]  ;;  %vm98_vm1 = vcmask 146432   ;;  %vm123_vm2 = vcmask 1041408   ;;  %s3217_s12 = smov 64  }
  0x28   :  { %v3306_v5 = vpack.c.bf16 %v70_v3, %v69_v2  ;;  %v88_v7 = vld [vmem:[#allocation2] sm:$0xff]  ;;  %v89_v8 = vld [vmem:[#allocation2 + $0x8] sm:$0xff]  ;;  %v3312_v10 = vpack.c.bf16 %v72_v6, %v71_v4  ;;  %v90_v11 = vld [vmem:[#allocation2 + $0x10] sm:$0x3]  ;;  %s3218_s1 = smov 32   ;;  %vm232_vm3 = vcmask 261120  }
  0x29   :  { %v2886_v9 = vpack.c.bf16 %v89_v8, %v88_v7  ;;  %v80_v12 = vld [vmem:[%s3681_s0] sm:$0xff]  ;;  %v62_v14 = vld [vmem:[%s3683_s2 + $0x8] sm:$0xff]  ;;  %v63_v17 = vld [vmem:[%s3683_s2 + $0x10] sm:$0xff]  ;;  %s3219_s30 = smov [#allocation7]  }
  0x2a   :  { %2892 = vmatpush3.bf16.msra.mxu1 %v3306_v5  ;;  %v61_v13 = vld [vmem:[%s3683_s2] sm:$0xff]  ;;  %2599 = vmatprep.mubr.msk.f32.mxu0 %vm98_vm1, %v80_v12  ;;  %v81_v16 = vld [vmem:[%s3681_s0 + $0x8] sm:$0xff]  ;;  %v64_v18 = vld [vmem:[%s3683_s2 + $0x18] sm:$0xff]  ;;  %s2412_s2 = sshll.u32 %s3219_s30, 4  ;;  %s2413_s2 = int_to_ptr.vmem [resolvable:$true] %s2412_s2 }
  0x2b   :  { %2893 = vmatprep.subr.bf16.mxu1 %v3214_v0  ;;  %2887 = vmatprep.subr.bf16.mxu0 %v2886_v9  ;;  %v3326_v15 = vpack.c.bf16 %v62_v14, %v61_v13  ;;  %v3341_v19 = vpack.c.bf16 %v64_v18, %v63_v17  ;;  %v3361_v22 = vld [vmem:[%s3684_s3] ss:$0 sm:$0xff]  ;;  %v66_v36 = vld [vmem:[%s3685_s4 + $0x8] sm:$0xff]  ;;  %v67_v37 = vld [vmem:[%s3685_s4 + $0x10] sm:$0xff]  ;;  %s3182_s11 = scalar_lea.vmem %s2413_s2, 128  ;;  %p3187_p3 = scmp.lt.s32.totalorder %s2413_s2, %s2413_s2 }
  0x2c   :  { %2889 = vmatpush3.bf16.msra.mxu0 %v2886_v9  ;;  %v65_v35 = vld [vmem:[%s3685_s4] sm:$0xff]  ;;  %v68_v39 = vld [vmem:[%s3685_s4 + $0x18] sm:$0xff]  ;;  %v82_v57 = vld [vmem:[%s3681_s0 + $0x10] sm:$0xff]  ;;  %p3183_p2 = scmp.ne.s32.totalorder %s2413_s2, %s3182_s11  ;;  %p3188_p4 = scmp.lt.s32.totalorder %s3182_s11, %s3182_s11 }
  0x2d   :  { %2597 = vmatprep.subr.msk.mxu0 %vm123_vm2, %v90_v11  ;;  %v3378_v38 = vpack.c.bf16 %v66_v36, %v65_v35  ;;  %v3384_v40 = vpack.c.bf16 %v68_v39, %v67_v37  ;;  %v3401_v45 = vld [vmem:[%s3687_s6] ss:$0 sm:$0xff]  ;;  %v83_v58 = vld [vmem:[%s3681_s0 + $0x18] sm:$0xff]  ;;  %v85_v60 = vld [vmem:[%s3681_s0 + $0x28] sm:$0xff] }
  0x2e   :  { %2895 = vmatpush3.bf16.msra.mxu1 %v3312_v10  ;;  %v84_v59 = vld [vmem:[%s3681_s0 + $0x20] sm:$0xff]  ;;  %v86_v61 = vld [vmem:[%s3681_s0 + $0x30] sm:$0xff]  ;;  %v87_v62 = vld [vmem:[%s3681_s0 + $0x38] sm:$0xff]  ;;  %p3189_p5 = por %p3188_p4, %p3187_p3 }
  0x2f   :  { %2896 = vmatprep.subr.bf16.mxu1 %v3214_v0 }
  0x30   :  { %2598 = vmatpush3.msk.msra.mxu0 %vm123_vm2, %v90_v11  ;;  %p3190_p6 = pnand %p3189_p5, %p3183_p2 }
  0x31   :  { %2620 = vmatmul.mubr.f32.vlgmr.msra.gmra.mrb[0].mxu1 %v3216_v1  ;;  %2600 = vmatmul.mubr.msk.f32.vlgmr.msra.gmra.mrb[0].mxu0 %vm98_vm1, %v81_v16 }
  0x32   :  { %2898 = vmatpush3.bf16.msra.mxu1 %v3326_v15  ;;  %2630 = vmatprep.mubr.msk.f32.mxu1 %vm3215_vm0, %v3216_v1 }
  0x33   :  { %2899 = vmatprep.subr.bf16.mxu1 %v3214_v0  ;;  %2908 = vmatprep.subr.bf16.mxu0 %v3214_v0 }
  0x34   :  { %2910 = vmatpush3.bf16.msra.mxu0 %v3306_v5  ;;  %2602 = vmatprep.mubr.msk.f32.mxu0 %vm98_vm1, %v82_v57 }
  0x35   :  { %2911 = vmatprep.subr.bf16.mxu0 %v3214_v0  ;;  %2603 = vmatmul.mubr.msk.f32.gmra.mrb[2].mxu0 %vm98_vm1, %v83_v58 }
  0x36   :  { %2901 = vmatpush3.bf16.msra.mxu1 %v3341_v19  ;;  %2605 = vmatprep.mubr.msk.f32.mxu0 %vm98_vm1, %v84_v59 }
  0x37   :  { %2902 = vmatprep.subr.bf16.mxu1 %v3214_v0 }
  0x38   :  { %2913 = vmatpush3.bf16.msra.mxu0 %v3312_v10 }
  0x39   :  { %2631 = vmatmul.mubr.f32.vlgmr.msra.gmra.mrb[2].mxu1 %v3216_v1  ;;  %2914 = vmatprep.subr.bf16.mxu0 %v3214_v0 }
  0x3a   :  { %2641 = vmatprep.mubr.msk.f32.mxu1 %vm3215_vm0, %v3216_v1  ;;  %2904 = vmatpush3.bf16.msra.mxu1 %v3378_v38 }
  0x3b   :  { %2905 = vmatprep.subr.bf16.mxu1 %v3214_v0  ;;  %2606 = vmatmul.mubr.msk.f32.gmra.mrb[4].mxu0 %vm98_vm1, %v85_v60 }
  0x3c   :  { %2608 = vmatprep.mubr.msk.f32.mxu0 %vm98_vm1, %v86_v61 }
  0x3e   :  { %2907 = vmatpush3.bf16.msra.mxu1 %v3384_v40 }
  0x3f   :  { %2926 = vmatprep.subr.bf16.mxu1 %v3214_v0  ;;  %2609 = vmatmul.mubr.msk.f32.gmra.mrb[6].mxu0 %vm98_vm1, %v87_v62 }
  0x40   :  { %2652 = vmatprep.mubr.msk.f32.mxu0 %vm3215_vm0, %v3216_v1 }
 0x104   :  { %v3356_v20 = vpop.f32.mrb[0].mxu0 }
 0x105   :  { %v193_v21 = vpop.f32.mrb[1].mxu0  ;;  %v199_v13 = vadd.f32 %v3356_v20, %v3361_v22 }
 0x106   :  { %v194_v23 = vadd.f32 %v3361_v22, %v193_v21 }
 0x108   :  { %v3437_v4 = vpop.f32.mrb[2].mxu0 }
 0x109   :  { %v3439_v6 = vpop.f32.mrb[3].mxu0 }
 0x10c   :  { %v372_v24 = vpop.f32.mrb[2].mxu1 }
 0x10d   :  { %v376_v25 = vadd.f32 %v372_v24, %v194_v23  ;;  %v2632_v26 = vpop.f32.mrb[3].mxu1 }
 0x10e   :  { %v3441_v7 = vpop.f32.mrb[4].mxu0 }
 0x10f   :  { %3074 = vtanh.f32 %v376_v25  ;;  %v3443_v8 = vpop.f32.mrb[5].mxu0 }
 0x112   :  { %v3445_v9 = vpop.f32.mrb[6].mxu0 }
 0x113   :  { %v3447_v11 = vpop.f32.mrb[7].mxu0 }
 0x119   :  { %v3075_v27 = vpop.eup %3074 }
 0x11a   :  { %382 = vrot.lane.b32.xlu0 %v3075_v27, %s3217_s12  ;;  %v378_v28 = vmul.f32 0.5, %v3075_v27 }
 0x11c   :  { %v379_v29 = vadd.f32 0.5, %v378_v28 }
 0x11e   :  { %v380_v32 = vmul.f32 0.0, %v379_v29 }
 0x18c   :  { %v383_v30 = vpop.permute.xlu0 %382 }
 0x18d   :  { %v385_v31 = vmul.f32 %v383_v30, %v379_v29 }
 0x18f   :  { %387 = vrot.lane.b32.xlu0 %v385_v31, %s3218_s1 }
 0x201   :  { %v388_v33 = vpop.permute.xlu0 %387 }
 0x202   :  { %v3366_v34 = vadd.f32 %v388_v33, %v380_v32 }
 0x204   :  { %3076 = vtanh.f32 %v3366_v34 }
 0x20e   :  { %v3077_v41 = vpop.eup %3076 }
 0x20f   :  { %393 = vrot.lane.b32.xlu1 %v3077_v41, %s3217_s12 }
 0x281   :  { %v394_v42 = vpop.permute.xlu1 %393 }
 0x282   :  { %v396_v43 = vmul.f32 %v394_v42, %v379_v29 }
 0x284   :  { %398 = vrot.lane.b32.xlu1 %v396_v43, %s3218_s1 }
 0x2f6   :  { %v399_v44 = vpop.permute.xlu1 %398 }
 0x2f7   :  { %2642 = vmatmul.mubr.msk.f32.vlgmr.msra.gmra.mrb[0].mxu1 %vm232_vm3, %v399_v44 }
 0x2f8   :  { %2928 = vmatpush3.bf16.msra.mxu1 %v3306_v5  ;;  %2685 = vmatprep.mubr.msk.f32.mxu1 %vm3215_vm0, %v3216_v1 }
 0x2f9   :  { %2929 = vmatprep.subr.bf16.mxu1 %v3214_v0 }
 0x2fc   :  { %2931 = vmatpush3.bf16.msra.mxu1 %v3312_v10 }
 0x2fd   :  { %2932 = vmatprep.subr.bf16.mxu1 %v3214_v0 }
 0x3ca   :  { %v468_v46 = vpop.f32.mrb[0].mxu1 }
 0x3cb   :  { %v3040_v47 = vadd.f32 %v3401_v45, %v468_v46  ;;  %v2643_v48 = vpop.f32.mrb[1].mxu1 }
 0x3cd   :  { %3078 = vtanh.f32 %v3040_v47 }
 0x3d7   :  { %v3079_v49 = vpop.eup %3078 }
 0x3d8   :  { %477 = vrot.lane.b32.xlu0 %v3079_v49, %s3217_s12  ;;  %v473_v50 = vmul.f32 0.5, %v3079_v49 }
 0x3da   :  { %v474_v51 = vadd.f32 0.5, %v473_v50  ;;  %v204_v50 = vadd.f32 %v3361_v22, %v3439_v6 }
 0x3dc   :  { %v475_v54 = vmul.f32 0.0, %v474_v51 }
 0x44a   :  { %v478_v52 = vpop.permute.xlu0 %477 }
 0x44b   :  { %v480_v53 = vmul.f32 %v478_v52, %v474_v51 }
 0x44d   :  { %482 = vrot.lane.b32.xlu1 %v480_v53, %s3218_s1 }
 0x4bf   :  { %v483_v55 = vpop.permute.xlu1 %482 }
 0x4c0   :  { %v3406_v56 = vadd.f32 %v483_v55, %v475_v54 }
 0x4c2   :  { %3080 = vtanh.f32 %v3406_v56 }
 0x4cc   :  { %v3081_v63 = vpop.eup %3080 }
 0x4cd   :  { %488 = vrot.lane.b32.xlu0 %v3081_v63, %s3217_s12 }
 0x53f   :  { %v489_v2 = vpop.permute.xlu0 %488 }
 0x540   :  { %v491_v3 = vmul.f32 %v489_v2, %v474_v51 }
 0x542   :  { %493 = vrot.lane.b32.xlu1 %v491_v3, %s3218_s1 }
 0x5b4   :  { %v494_v12 = vpop.permute.xlu1 %493 }
 0x5b5   :  { %2653 = vmatmul.mubr.msk.f32.vlgmr.msra.gmra.mrb[8].mxu0 %vm232_vm3, %v494_v12 }
 0x5b6   :  { %2916 = vmatpush3.bf16.msra.mxu0 %v3326_v15  ;;  %2663 = vmatprep.mubr.msk.f32.mxu0 %vm3215_vm0, %v3216_v1 }
 0x5b7   :  { %2917 = vmatprep.subr.bf16.mxu0 %v3214_v0 }
 0x5ba   :  { %2919 = vmatpush3.bf16.msra.mxu0 %v3341_v19 }
 0x5bb   :  { %2920 = vmatprep.subr.bf16.mxu0 %v3214_v0 }
 0x5bd   :  { %2664 = vmatmul.mubr.msk.f32.vlgmr.msra.gmra.mrb[10].mxu0 %vm232_vm3, %v399_v44 }
 0x5be   :  { %2922 = vmatpush3.bf16.msra.mxu0 %v3378_v38  ;;  %2674 = vmatprep.mubr.msk.f32.mxu0 %vm3215_vm0, %v3216_v1 }
 0x5bf   :  { %2923 = vmatprep.subr.bf16.mxu0 %v3214_v0 }
 0x5c2   :  { %2925 = vmatpush3.bf16.msra.mxu0 %v3384_v40 }
 0x5c3   :  { %2944 = vmatprep.subr.bf16.mxu0 %v3214_v0 }
 0x690   :  { %v633_v14 = vpop.f32.mrb[10].mxu0 }
 0x691   :  { %v637_v16 = vadd.f32 %v633_v14, %v199_v13  ;;  %v2665_v17 = vpop.f32.mrb[11].mxu0 }
 0x693   :  { %3082 = vtanh.f32 %v637_v16 }
 0x69d   :  { %v3083_v18 = vpop.eup %3082 }
 0x69e   :  { %643 = vrot.lane.b32.xlu0 %v3083_v18, %s3217_s12  ;;  %v639_v21 = vmul.f32 0.5, %v3083_v18 }
 0x6a0   :  { %v640_v23 = vadd.f32 0.5, %v639_v21 }
 0x6a2   :  { %v641_v26 = vmul.f32 %v640_v23, %v3366_v34 }
 0x710   :  { %v644_v24 = vpop.permute.xlu0 %643 }
 0x711   :  { %v646_v25 = vmul.f32 %v644_v24, %v640_v23 }
 0x713   :  { %648 = vrot.lane.b32.xlu1 %v646_v25, %s3218_s1 }
 0x785   :  { %v649_v27 = vpop.permute.xlu1 %648 }
 0x786   :  { %v651_v28 = vadd.f32 %v649_v27, %v641_v26 }
 0x788   :  { %3084 = vtanh.f32 %v651_v28 }
 0x792   :  { %v3085_v29 = vpop.eup %3084 }
 0x793   :  { %654 = vrot.lane.b32.xlu0 %v3085_v29, %s3217_s12 }
 0x805   :  { %v655_v20 = vpop.permute.xlu0 %654 }
 0x806   :  { %v657_v30 = vmul.f32 %v655_v20, %v640_v23  ;;  %v209_v20 = vadd.f32 %v3437_v4, %v3361_v22 }
 0x808   :  { %659 = vrot.lane.b32.xlu1 %v657_v30, %s3218_s1 }
 0x87a   :  { %v660_v31 = vpop.permute.xlu1 %659 }
 0x87b   :  { %2675 = vmatmul.mubr.msk.f32.vlgmr.msra.gmra.mrb[8].mxu0 %vm232_vm3, %v660_v31 }
 0x87c   :  { %2946 = vmatpush3.bf16.msra.mxu0 %v3306_v5  ;;  %2718 = vmatprep.mubr.msk.f32.mxu0 %vm3215_vm0, %v3216_v1 }
 0x87d   :  { %2947 = vmatprep.subr.bf16.mxu0 %v3214_v0 }
 0x880   :  { %2949 = vmatpush3.bf16.msra.mxu0 %v3312_v10 }
 0x881   :  { %2950 = vmatprep.subr.bf16.mxu0 %v3214_v0 }
 0x94e   :  { %v729_v32 = vpop.f32.mrb[8].mxu0 }
 0x94f   :  { %v3041_v33 = vadd.f32 %v3401_v45, %v729_v32  ;;  %v2676_v34 = vpop.f32.mrb[9].mxu0 }
 0x951   :  { %3086 = vtanh.f32 %v3041_v33 }
 0x95b   :  { %v3087_v35 = vpop.eup %3086 }
 0x95c   :  { %738 = vrot.lane.b32.xlu0 %v3087_v35, %s3217_s12  ;;  %v734_v36 = vmul.f32 0.5, %v3087_v35 }
 0x95e   :  { %v735_v37 = vadd.f32 0.5, %v734_v36 }
 0x960   :  { %v736_v42 = vmul.f32 %v735_v37, %v3406_v56 }
 0x9ce   :  { %v739_v39 = vpop.permute.xlu0 %738 }
 0x9cf   :  { %v741_v41 = vmul.f32 %v739_v39, %v735_v37 }
 0x9d1   :  { %743 = vrot.lane.b32.xlu1 %v741_v41, %s3218_s1 }
 0xa43   :  { %v744_v43 = vpop.permute.xlu1 %743 }
 0xa44   :  { %v746_v44 = vadd.f32 %v744_v43, %v736_v42 }
 0xa46   :  { %3088 = vtanh.f32 %v746_v44 }
 0xa50   :  { %v3089_v46 = vpop.eup %3088 }
 0xa51   :  { %749 = vrot.lane.b32.xlu0 %v3089_v46, %s3217_s12 }
 0xac3   :  { %v750_v47 = vpop.permute.xlu0 %749 }
 0xac4   :  { %v752_v48 = vmul.f32 %v750_v47, %v735_v37 }
 0xac6   :  { %754 = vrot.lane.b32.xlu1 %v752_v48, %s3218_s1 }
 0xb38   :  { %v755_v49 = vpop.permute.xlu1 %754 }
 0xb39   :  { %2686 = vmatmul.mubr.msk.f32.vlgmr.msra.gmra.mrb[4].mxu1 %vm232_vm3, %v755_v49 }
 0xb3a   :  { %2934 = vmatpush3.bf16.msra.mxu1 %v3326_v15  ;;  %2696 = vmatprep.mubr.msk.f32.mxu1 %vm3215_vm0, %v3216_v1 }
 0xb3b   :  { %2935 = vmatprep.subr.bf16.mxu1 %v3214_v0 }
 0xb3e   :  { %2937 = vmatpush3.bf16.msra.mxu1 %v3341_v19 }
 0xb3f   :  { %2938 = vmatprep.subr.bf16.mxu1 %v3214_v0 }
 0xb41   :  { %2697 = vmatmul.mubr.msk.f32.vlgmr.msra.gmra.mrb[6].mxu1 %vm232_vm3, %v660_v31 }
 0xb42   :  { %2940 = vmatpush3.bf16.msra.mxu1 %v3378_v38  ;;  %2707 = vmatprep.mubr.msk.f32.mxu1 %vm3215_vm0, %v3216_v1 }
 0xb43   :  { %2941 = vmatprep.subr.bf16.mxu1 %v3214_v0 }
 0xb46   :  { %2943 = vmatpush3.bf16.msra.mxu1 %v3384_v40 }
 0xb47   :  { %2962 = vmatprep.subr.bf16.mxu1 %v3214_v0 }
 0xc14   :  { %v894_v51 = vpop.f32.mrb[6].mxu1 }
 0xc15   :  { %v898_v52 = vadd.f32 %v894_v51, %v204_v50  ;;  %v2698_v53 = vpop.f32.mrb[7].mxu1 }
 0xc17   :  { %3090 = vtanh.f32 %v898_v52 }
 0xc21   :  { %v3091_v54 = vpop.eup %3090 }
 0xc22   :  { %904 = vrot.lane.b32.xlu0 %v3091_v54, %s3217_s12  ;;  %v900_v55 = vmul.f32 0.5, %v3091_v54 }
 0xc24   :  { %v901_v56 = vadd.f32 0.5, %v900_v55 }
 0xc26   :  { %v902_v59 = vmul.f32 %v901_v56, %v651_v28 }
 0xc94   :  { %v905_v57 = vpop.permute.xlu0 %904 }
 0xc95   :  { %v907_v58 = vmul.f32 %v905_v57, %v901_v56 }
 0xc97   :  { %909 = vrot.lane.b32.xlu1 %v907_v58, %s3218_s1 }
 0xd09   :  { %v910_v60 = vpop.permute.xlu1 %909 }
 0xd0a   :  { %v912_v61 = vadd.f32 %v910_v60, %v902_v59 }
 0xd0c   :  { %3092 = vtanh.f32 %v912_v61 }
 0xd16   :  { %v3093_v62 = vpop.eup %3092 }
 0xd17   :  { %915 = vrot.lane.b32.xlu0 %v3093_v62, %s3217_s12  ;;  %v214_v62 = vadd.f32 %v3361_v22, %v3443_v8 }
 0xd89   :  { %v916_v63 = vpop.permute.xlu0 %915 }
 0xd8a   :  { %v918_v2 = vmul.f32 %v916_v63, %v901_v56 }
 0xd8c   :  { %920 = vrot.lane.b32.xlu1 %v918_v2, %s3218_s1 }
 0xdfe   :  { %v921_v3 = vpop.permute.xlu1 %920 }
 0xdff   :  { %2708 = vmatmul.mubr.msk.f32.vlgmr.msra.gmra.mrb[4].mxu1 %vm232_vm3, %v921_v3 }
 0xe00   :  { %2964 = vmatpush3.bf16.msra.mxu1 %v3306_v5  ;;  %2751 = vmatprep.mubr.msk.f32.mxu1 %vm3215_vm0, %v3216_v1 }
 0xe01   :  { %2965 = vmatprep.subr.bf16.mxu1 %v3214_v0 }
 0xe04   :  { %2967 = vmatpush3.bf16.msra.mxu1 %v3312_v10 }
 0xe05   :  { %2968 = vmatprep.subr.bf16.mxu1 %v3214_v0 }
 0xed2   :  { %v990_v6 = vpop.f32.mrb[4].mxu1 }
 0xed3   :  { %v3042_v12 = vadd.f32 %v3401_v45, %v990_v6  ;;  %v2709_v13 = vpop.f32.mrb[5].mxu1 }
 0xed5   :  { %3094 = vtanh.f32 %v3042_v12 }
 0xedf   :  { %v3095_v14 = vpop.eup %3094 }
 0xee0   :  { %999 = vrot.lane.b32.xlu0 %v3095_v14, %s3217_s12  ;;  %v995_v16 = vmul.f32 0.5, %v3095_v14 }
 0xee2   :  { %v996_v17 = vadd.f32 0.5, %v995_v16 }
 0xee4   :  { %v997_v23 = vmul.f32 %v996_v17, %v746_v44 }
 0xf52   :  { %v1000_v18 = vpop.permute.xlu0 %999 }
 0xf53   :  { %v1002_v21 = vmul.f32 %v1000_v18, %v996_v17 }
 0xf55   :  { %1004 = vrot.lane.b32.xlu1 %v1002_v21, %s3218_s1 }
 0xfc7   :  { %v1005_v24 = vpop.permute.xlu1 %1004 }
 0xfc8   :  { %v1007_v25 = vadd.f32 %v1005_v24, %v997_v23 }
 0xfca   :  { %3096 = vtanh.f32 %v1007_v25 }
 0xfd4   :  { %v3097_v26 = vpop.eup %3096 }
 0xfd5   :  { %1010 = vrot.lane.b32.xlu0 %v3097_v26, %s3217_s12 }
0x1047   :  { %v1011_v27 = vpop.permute.xlu0 %1010 }
0x1048   :  { %v1013_v28 = vmul.f32 %v1011_v27, %v996_v17 }
0x104a   :  { %1015 = vrot.lane.b32.xlu1 %v1013_v28, %s3218_s1 }
0x10bc   :  { %v1016_v29 = vpop.permute.xlu1 %1015 }
0x10bd   :  { %2719 = vmatmul.mubr.msk.f32.vlgmr.msra.gmra.mrb[12].mxu0 %vm232_vm3, %v1016_v29 }
0x10be   :  { %2952 = vmatpush3.bf16.msra.mxu0 %v3326_v15  ;;  %2729 = vmatprep.mubr.msk.f32.mxu0 %vm3215_vm0, %v3216_v1 }
0x10bf   :  { %2953 = vmatprep.subr.bf16.mxu0 %v3214_v0 }
0x10c2   :  { %2955 = vmatpush3.bf16.msra.mxu0 %v3341_v19 }
0x10c3   :  { %2956 = vmatprep.subr.bf16.mxu0 %v3214_v0 }
0x10c5   :  { %2730 = vmatmul.mubr.msk.f32.vlgmr.msra.gmra.mrb[14].mxu0 %vm232_vm3, %v921_v3 }
0x10c6   :  { %2958 = vmatpush3.bf16.msra.mxu0 %v3378_v38  ;;  %2740 = vmatprep.mubr.msk.f32.mxu0 %vm3215_vm0, %v3216_v1 }
0x10c7   :  { %2959 = vmatprep.subr.bf16.mxu0 %v3214_v0 }
0x10ca   :  { %2961 = vmatpush3.bf16.msra.mxu0 %v3384_v40 }
0x10cb   :  { %2980 = vmatprep.subr.bf16.mxu0 %v3214_v0 }
0x1198   :  { %v1155_v30 = vpop.f32.mrb[14].mxu0 }
0x1199   :  { %v1159_v31 = vadd.f32 %v1155_v30, %v209_v20  ;;  %v2731_v32 = vpop.f32.mrb[15].mxu0 }
0x119b   :  { %3098 = vtanh.f32 %v1159_v31 }
0x11a5   :  { %v3099_v33 = vpop.eup %3098 }
0x11a6   :  { %1165 = vrot.lane.b32.xlu0 %v3099_v33, %s3217_s12  ;;  %v1161_v34 = vmul.f32 0.5, %v3099_v33 }
0x11a8   :  { %v1162_v35 = vadd.f32 0.5, %v1161_v34 }
0x11aa   :  { %v1163_v39 = vmul.f32 %v1162_v35, %v912_v61 }
0x1218   :  { %v1166_v36 = vpop.permute.xlu0 %1165 }
0x1219   :  { %v1168_v37 = vmul.f32 %v1166_v36, %v1162_v35 }
0x121b   :  { %1170 = vrot.lane.b32.xlu1 %v1168_v37, %s3218_s1 }
0x128d   :  { %v1171_v41 = vpop.permute.xlu1 %1170 }
0x128e   :  { %v1173_v42 = vadd.f32 %v1171_v41, %v1163_v39 }
0x1290   :  { %3100 = vtanh.f32 %v1173_v42 }
0x129a   :  { %v3101_v43 = vpop.eup %3100 }
0x129b   :  { %1176 = vrot.lane.b32.xlu0 %v3101_v43, %s3217_s12 }
0x130d   :  { %v1177_v4 = vpop.permute.xlu0 %1176 }
0x130e   :  { %v1179_v44 = vmul.f32 %v1177_v4, %v1162_v35 }
0x1310   :  { %1181 = vrot.lane.b32.xlu1 %v1179_v44, %s3218_s1 }
0x1382   :  { %v1182_v46 = vpop.permute.xlu1 %1181 }
0x1383   :  { %2741 = vmatmul.mubr.msk.f32.vlgmr.msra.gmra.mrb[12].mxu0 %vm232_vm3, %v1182_v46 }
0x1384   :  { %2982 = vmatpush3.bf16.msra.mxu0 %v3306_v5  ;;  %2784 = vmatprep.mubr.msk.f32.mxu0 %vm3215_vm0, %v3216_v1 }
0x1385   :  { %2983 = vmatprep.subr.bf16.mxu0 %v3214_v0 }
0x1388   :  { %2985 = vmatpush3.bf16.msra.mxu0 %v3312_v10 }
0x1389   :  { %2986 = vmatprep.subr.bf16.mxu0 %v3214_v0 }
0x1456   :  { %v1251_v47 = vpop.f32.mrb[12].mxu0 }
0x1457   :  { %v3043_v48 = vadd.f32 %v3401_v45, %v1251_v47  ;;  %v2742_v49 = vpop.f32.mrb[13].mxu0 }
0x1459   :  { %3102 = vtanh.f32 %v3043_v48 }
0x1463   :  { %v3103_v50 = vpop.eup %3102 }
0x1464   :  { %1260 = vrot.lane.b32.xlu0 %v3103_v50, %s3217_s12  ;;  %v1256_v51 = vmul.f32 0.5, %v3103_v50 }
0x1466   :  { %v1257_v52 = vadd.f32 0.5, %v1256_v51 }
0x1468   :  { %v1258_v55 = vmul.f32 %v1257_v52, %v1007_v25 }
0x14d6   :  { %v1261_v53 = vpop.permute.xlu0 %1260 }
0x14d7   :  { %v1263_v54 = vmul.f32 %v1261_v53, %v1257_v52 }
0x14d9   :  { %1265 = vrot.lane.b32.xlu1 %v1263_v54, %s3218_s1 }
0x154b   :  { %v1266_v56 = vpop.permute.xlu1 %1265 }
0x154c   :  { %v1268_v57 = vadd.f32 %v1266_v56, %v1258_v55 }
0x154e   :  { %3104 = vtanh.f32 %v1268_v57 }
0x1558   :  { %v3105_v58 = vpop.eup %3104 }
0x1559   :  { %1271 = vrot.lane.b32.xlu0 %v3105_v58, %s3217_s12 }
0x15cb   :  { %v1272_v59 = vpop.permute.xlu0 %1271 }
0x15cc   :  { %v1274_v60 = vmul.f32 %v1272_v59, %v1257_v52 }
0x15ce   :  { %1276 = vrot.lane.b32.xlu1 %v1274_v60, %s3218_s1 }
0x1640   :  { %v1277_v61 = vpop.permute.xlu1 %1276 }
0x1641   :  { %2752 = vmatmul.mubr.msk.f32.vlgmr.msra.gmra.mrb[8].mxu1 %vm232_vm3, %v1277_v61 }
0x1642   :  { %2970 = vmatpush3.bf16.msra.mxu1 %v3326_v15  ;;  %2762 = vmatprep.mubr.msk.f32.mxu1 %vm3215_vm0, %v3216_v1 }
0x1643   :  { %2971 = vmatprep.subr.bf16.mxu1 %v3214_v0 }
0x1646   :  { %2973 = vmatpush3.bf16.msra.mxu1 %v3341_v19 }
0x1647   :  { %2974 = vmatprep.subr.bf16.mxu1 %v3214_v0 }
0x1649   :  { %2763 = vmatmul.mubr.msk.f32.vlgmr.msra.gmra.mrb[10].mxu1 %vm232_vm3, %v1182_v46 }
0x164a   :  { %2976 = vmatpush3.bf16.msra.mxu1 %v3378_v38  ;;  %2773 = vmatprep.mubr.msk.f32.mxu1 %vm3215_vm0, %v3216_v1 }
0x164b   :  { %2977 = vmatprep.subr.bf16.mxu1 %v3214_v0 }
0x164e   :  { %2979 = vmatpush3.bf16.msra.mxu1 %v3384_v40 }
0x164f   :  { %2998 = vmatprep.subr.bf16.mxu1 %v3214_v0 }
0x171c   :  { %v1416_v63 = vpop.f32.mrb[10].mxu1 }
0x171d   :  { %v1420_v2 = vadd.f32 %v1416_v63, %v214_v62  ;;  %v2764_v3 = vpop.f32.mrb[11].mxu1 }
0x171f   :  { %3106 = vtanh.f32 %v1420_v2 }
0x1729   :  { %v3107_v6 = vpop.eup %3106 }
0x172a   :  { %1426 = vrot.lane.b32.xlu0 %v3107_v6, %s3217_s12  ;;  %v1422_v12 = vmul.f32 0.5, %v3107_v6 }
0x172c   :  { %v1423_v13 = vadd.f32 0.5, %v1422_v12 }
0x172e   :  { %v1424_v17 = vmul.f32 %v1423_v13, %v1173_v42  ;;  %v219_v42 = vadd.f32 %v3441_v7, %v3361_v22 }
0x179c   :  { %v1427_v14 = vpop.permute.xlu0 %1426 }
0x179d   :  { %v1429_v16 = vmul.f32 %v1427_v14, %v1423_v13 }
0x179f   :  { %1431 = vrot.lane.b32.xlu1 %v1429_v16, %s3218_s1  ;;  %v224_v16 = vadd.f32 %v3361_v22, %v3447_v11 }
0x1811   :  { %v1432_v18 = vpop.permute.xlu1 %1431 }
0x1812   :  { %v1434_v21 = vadd.f32 %v1432_v18, %v1424_v17 }
0x1814   :  { %3108 = vtanh.f32 %v1434_v21 }
0x181e   :  { %v3109_v23 = vpop.eup %3108 }
0x181f   :  { %1437 = vrot.lane.b32.xlu0 %v3109_v23, %s3217_s12 }
0x1891   :  { %v1438_v8 = vpop.permute.xlu0 %1437 }
0x1892   :  { %v1440_v24 = vmul.f32 %v1438_v8, %v1423_v13 }
0x1894   :  { %1442 = vrot.lane.b32.xlu1 %v1440_v24, %s3218_s1 }
0x1906   :  { %v1443_v25 = vpop.permute.xlu1 %1442 }
0x1907   :  { %2774 = vmatmul.mubr.msk.f32.vlgmr.msra.gmra.mrb[8].mxu1 %vm232_vm3, %v1443_v25 }
0x1908   :  { %3000 = vmatpush3.bf16.msra.mxu1 %v3306_v5  ;;  %2817 = vmatprep.mubr.msk.f32.mxu1 %vm3215_vm0, %v3216_v1 }
0x1909   :  { %3001 = vmatprep.subr.bf16.mxu1 %v3214_v0 }
0x190c   :  { %3003 = vmatpush3.bf16.msra.mxu1 %v3312_v10 }
0x190d   :  { %3004 = vmatprep.subr.bf16.mxu1 %v3214_v0 }
0x19da   :  { %v1512_v26 = vpop.f32.mrb[8].mxu1 }
0x19db   :  { %v3044_v27 = vadd.f32 %v3401_v45, %v1512_v26  ;;  %v2775_v28 = vpop.f32.mrb[9].mxu1 }
0x19dd   :  { %3110 = vtanh.f32 %v3044_v27 }
0x19e7   :  { %v3111_v29 = vpop.eup %3110 }
0x19e8   :  { %1521 = vrot.lane.b32.xlu0 %v3111_v29, %s3217_s12  ;;  %v1517_v20 = vmul.f32 0.5, %v3111_v29 }
0x19ea   :  { %v1518_v30 = vadd.f32 0.5, %v1517_v20 }
0x19ec   :  { %v1519_v33 = vmul.f32 %v1518_v30, %v1268_v57 }
0x1a5a   :  { %v1522_v31 = vpop.permute.xlu0 %1521 }
0x1a5b   :  { %v1524_v32 = vmul.f32 %v1522_v31, %v1518_v30 }
0x1a5d   :  { %1526 = vrot.lane.b32.xlu1 %v1524_v32, %s3218_s1 }
0x1acf   :  { %v1527_v34 = vpop.permute.xlu1 %1526 }
0x1ad0   :  { %v1529_v35 = vadd.f32 %v1527_v34, %v1519_v33 }
0x1ad2   :  { %3112 = vtanh.f32 %v1529_v35 }
0x1adc   :  { %v3113_v36 = vpop.eup %3112 }
0x1add   :  { %1532 = vrot.lane.b32.xlu0 %v3113_v36, %s3217_s12 }
0x1b4f   :  { %v1533_v37 = vpop.permute.xlu0 %1532 }
0x1b50   :  { %v1535_v39 = vmul.f32 %v1533_v37, %v1518_v30 }
0x1b52   :  { %1537 = vrot.lane.b32.xlu1 %v1535_v39, %s3218_s1 }
0x1bc4   :  { %v1538_v41 = vpop.permute.xlu1 %1537 }
0x1bc5   :  { %2785 = vmatmul.mubr.msk.f32.vlgmr.msra.gmra.mrb[16].mxu0 %vm232_vm3, %v1538_v41 }
0x1bc6   :  { %2988 = vmatpush3.bf16.msra.mxu0 %v3326_v15  ;;  %2795 = vmatprep.mubr.msk.f32.mxu0 %vm3215_vm0, %v3216_v1 }
0x1bc7   :  { %2989 = vmatprep.subr.bf16.mxu0 %v3214_v0 }
0x1bca   :  { %2991 = vmatpush3.bf16.msra.mxu0 %v3341_v19 }
0x1bcb   :  { %2992 = vmatprep.subr.bf16.mxu0 %v3214_v0 }
0x1bcd   :  { %2796 = vmatmul.mubr.msk.f32.vlgmr.msra.gmra.mrb[18].mxu0 %vm232_vm3, %v1443_v25 }
0x1bce   :  { %2994 = vmatpush3.bf16.msra.mxu0 %v3378_v38  ;;  %2806 = vmatprep.mubr.msk.f32.mxu0 %vm3215_vm0, %v3216_v1 }
0x1bcf   :  { %2995 = vmatprep.subr.bf16.mxu0 %v3214_v0 }
0x1bd2   :  { %2997 = vmatpush3.bf16.msra.mxu0 %v3384_v40 }
0x1bd3   :  { %3016 = vmatprep.subr.bf16.mxu0 %v3214_v0 }
0x1ca0   :  { %v1677_v43 = vpop.f32.mrb[18].mxu0 }
0x1ca1   :  { %v1681_v4 = vadd.f32 %v1677_v43, %v219_v42  ;;  %v2797_v44 = vpop.f32.mrb[19].mxu0 }
0x1ca3   :  { %3114 = vtanh.f32 %v1681_v4 }
0x1cad   :  { %v3115_v46 = vpop.eup %3114 }
0x1cae   :  { %1687 = vrot.lane.b32.xlu0 %v3115_v46, %s3217_s12  ;;  %v1683_v47 = vmul.f32 0.5, %v3115_v46 }
0x1cb0   :  { %v1684_v48 = vadd.f32 0.5, %v1683_v47 }
0x1cb2   :  { %v1685_v51 = vmul.f32 %v1684_v48, %v1434_v21 }
0x1d20   :  { %v1688_v49 = vpop.permute.xlu0 %1687 }
0x1d21   :  { %v1690_v50 = vmul.f32 %v1688_v49, %v1684_v48 }
0x1d23   :  { %1692 = vrot.lane.b32.xlu1 %v1690_v50, %s3218_s1 }
0x1d95   :  { %v1693_v52 = vpop.permute.xlu1 %1692 }
0x1d96   :  { %v1695_v53 = vadd.f32 %v1693_v52, %v1685_v51 }
0x1d98   :  { %3116 = vtanh.f32 %v1695_v53 }
0x1da2   :  { %v3117_v54 = vpop.eup %3116 }
0x1da3   :  { %1698 = vrot.lane.b32.xlu0 %v3117_v54, %s3217_s12 }
0x1e15   :  { %v1699_v7 = vpop.permute.xlu0 %1698 }
0x1e16   :  { %v1701_v55 = vmul.f32 %v1699_v7, %v1684_v48 }
0x1e18   :  { %1703 = vrot.lane.b32.xlu1 %v1701_v55, %s3218_s1 }
0x1e8a   :  { %v1704_v56 = vpop.permute.xlu1 %1703 }
0x1e8b   :  { %2807 = vmatmul.mubr.msk.f32.vlgmr.msra.gmra.mrb[16].mxu0 %vm232_vm3, %v1704_v56 }
0x1e8c   :  { %3018 = vmatpush3.bf16.msra.mxu0 %v3306_v5  ;;  %2850 = vmatprep.mubr.msk.f32.mxu0 %vm3215_vm0, %v3216_v1 }
0x1e8d   :  { %3019 = vmatprep.subr.bf16.mxu0 %v3214_v0 }
0x1e90   :  { %3021 = vmatpush3.bf16.msra.mxu0 %v3312_v10 }
0x1e91   :  { %3022 = vmatprep.subr.bf16.mxu0 %v3214_v0 }
0x1f5e   :  { %v1773_v57 = vpop.f32.mrb[16].mxu0 }
0x1f5f   :  { %v3045_v58 = vadd.f32 %v3401_v45, %v1773_v57  ;;  %v2808_v59 = vpop.f32.mrb[17].mxu0 }
0x1f61   :  { %3118 = vtanh.f32 %v3045_v58 }
0x1f6b   :  { %v3119_v60 = vpop.eup %3118 }
0x1f6c   :  { %1782 = vrot.lane.b32.xlu0 %v3119_v60, %s3217_s12  ;;  %v1778_v61 = vmul.f32 0.5, %v3119_v60 }
0x1f6e   :  { %v1779_v62 = vadd.f32 0.5, %v1778_v61 }
0x1f70   :  { %v1780_v2 = vmul.f32 %v1779_v62, %v1529_v35 }
0x1fde   :  { %v1783_v5 = vpop.permute.xlu0 %1782 }
0x1fdf   :  { %v1785_v63 = vmul.f32 %v1783_v5, %v1779_v62 }
0x1fe1   :  { %1787 = vrot.lane.b32.xlu1 %v1785_v63, %s3218_s1 }
0x2053   :  { %v1788_v3 = vpop.permute.xlu1 %1787 }
0x2054   :  { %v1790_v6 = vadd.f32 %v1788_v3, %v1780_v2 }
0x2056   :  { %3120 = vtanh.f32 %v1790_v6 }
0x2060   :  { %v3121_v10 = vpop.eup %3120 }
0x2061   :  { %1793 = vrot.lane.b32.xlu0 %v3121_v10, %s3217_s12  ;;  %v2319_v10 = vld [vmem:[#allocation5] sm:$0xff] }
0x20d3   :  { %v1794_v12 = vpop.permute.xlu0 %1793 }
0x20d4   :  { %v1796_v13 = vmul.f32 %v1794_v12, %v1779_v62  ;;  %v2320_v12 = vld [vmem:[#allocation5 + $0x8] sm:$0xff] }
0x20d6   :  { %1798 = vrot.lane.b32.xlu1 %v1796_v13, %s3218_s1  ;;  %v2321_v13 = vld [vmem:[#allocation5 + $0x10] sm:$0xff] }
0x2148   :  { %v1799_v14 = vpop.permute.xlu1 %1798 }
0x2149   :  { %2818 = vmatmul.mubr.msk.f32.vlgmr.msra.gmra.mrb[12].mxu1 %vm232_vm3, %v1799_v14  ;;  %v3035_v14 = vpack.c.bf16 %v2320_v12, %v2319_v10 }
0x214a   :  { %3006 = vmatpush3.bf16.msra.mxu1 %v3326_v15  ;;  %2828 = vmatprep.mubr.msk.f32.mxu1 %vm3215_vm0, %v3216_v1 }
0x214b   :  { %3007 = vmatprep.subr.bf16.mxu1 %v3214_v0 }
0x214e   :  { %3009 = vmatpush3.bf16.msra.mxu1 %v3341_v19 }
0x214f   :  { %3010 = vmatprep.subr.bf16.mxu1 %v3214_v0 }
0x2151   :  { %2829 = vmatmul.mubr.msk.f32.vlgmr.msra.gmra.mrb[14].mxu1 %vm232_vm3, %v1704_v56 }
0x2152   :  { %3012 = vmatpush3.bf16.msra.mxu1 %v3378_v38  ;;  %2839 = vmatprep.mubr.msk.f32.mxu1 %vm3215_vm0, %v3216_v1 }
0x2153   :  { %3013 = vmatprep.subr.bf16.mxu1 %v3214_v0 }
0x2156   :  { %3015 = vmatpush3.bf16.msra.mxu1 %v3384_v40 }
0x2157   :  { %3034 = vmatprep.subr.bf16.mxu1 %v3214_v0 }
0x2224   :  { %v1938_v17 = vpop.f32.mrb[14].mxu1 }
0x2225   :  { %v1942_v18 = vadd.f32 %v1938_v17, %v224_v16  ;;  %v2830_v21 = vpop.f32.mrb[15].mxu1 }
0x2227   :  { %3122 = vtanh.f32 %v1942_v18 }
0x2231   :  { %v3123_v23 = vpop.eup %3122 }
0x2232   :  { %1948 = vrot.lane.b32.xlu0 %v3123_v23, %s3217_s12  ;;  %v1944_v8 = vmul.f32 0.5, %v3123_v23 }
0x2234   :  { %v1945_v24 = vadd.f32 0.5, %v1944_v8  ;;  %v2455_v8 = vld [vmem:[%s3689_s8] ss:$0 sm:$0xff] }
0x2236   :  { %v1946_v27 = vmul.f32 %v1945_v24, %v1695_v53 }
0x22a4   :  { %v1949_v25 = vpop.permute.xlu0 %1948 }
0x22a5   :  { %v1951_v26 = vmul.f32 %v1949_v25, %v1945_v24 }
0x22a7   :  { %1953 = vrot.lane.b32.xlu1 %v1951_v26, %s3218_s1 }
0x2319   :  { %v1954_v28 = vpop.permute.xlu1 %1953 }
0x231a   :  { %v1956_v29 = vadd.f32 %v1954_v28, %v1946_v27 }
0x231c   :  { %3124 = vtanh.f32 %v1956_v29 }
0x2326   :  { %v3125_v20 = vpop.eup %3124 }
0x2327   :  { %1959 = vrot.lane.b32.xlu0 %v3125_v20, %s3217_s12 }
0x2399   :  { %v1960_v11 = vpop.permute.xlu0 %1959 }
0x239a   :  { %v1962_v30 = vmul.f32 %v1960_v11, %v1945_v24 }
0x239c   :  { %1964 = vrot.lane.b32.xlu1 %v1962_v30, %s3218_s1 }
0x240e   :  { %v1965_v31 = vpop.permute.xlu1 %1964 }
0x240f   :  { %2840 = vmatmul.mubr.msk.f32.vlgmr.msra.gmra.mrb[12].mxu1 %vm232_vm3, %v1965_v31 }
0x2410   :  { %2883 = vmatprep.mubr.msk.f32.mxu1 %vm3215_vm0, %v3216_v1  ;;  %3036 = vmatpush3.bf16.msra.mxu1 %v3035_v14 }
0x2411   :  { %3037 = vmatprep.subr.bf16.mxu1 %v3214_v0 }
0x24e2   :  { %v2034_v32 = vpop.f32.mrb[12].mxu1 }
0x24e3   :  { %v3046_v33 = vadd.f32 %v3401_v45, %v2034_v32  ;;  %v2841_v34 = vpop.f32.mrb[13].mxu1 }
0x24e5   :  { %3126 = vtanh.f32 %v3046_v33 }
0x24ef   :  { %v3127_v35 = vpop.eup %3126 }
0x24f0   :  { %2043 = vrot.lane.b32.xlu0 %v3127_v35, %s3217_s12  ;;  %v2039_v36 = vmul.f32 0.5, %v3127_v35 }
0x24f2   :  { %v2040_v37 = vadd.f32 0.5, %v2039_v36 }
0x24f4   :  { %v2041_v42 = vmul.f32 %v2040_v37, %v1790_v6 }
0x2562   :  { %v2044_v39 = vpop.permute.xlu0 %2043 }
0x2563   :  { %v2046_v41 = vmul.f32 %v2044_v39, %v2040_v37 }
0x2565   :  { %2048 = vrot.lane.b32.xlu1 %v2046_v41, %s3218_s1 }
0x25d7   :  { %v2049_v43 = vpop.permute.xlu1 %2048 }
0x25d8   :  { %v2051_v4 = vadd.f32 %v2049_v43, %v2041_v42 }
0x25da   :  { %3128 = vtanh.f32 %v2051_v4 }
0x25e4   :  { %v3129_v44 = vpop.eup %3128 }
0x25e5   :  { %2054 = vrot.lane.b32.xlu0 %v3129_v44, %s3217_s12 }
0x2657   :  { %v2055_v46 = vpop.permute.xlu0 %2054 }
0x2658   :  { %v2057_v47 = vmul.f32 %v2055_v46, %v2040_v37 }
0x265a   :  { %2059 = vrot.lane.b32.xlu1 %v2057_v47, %s3218_s1 }
0x26cc   :  { %v2060_v48 = vpop.permute.xlu1 %2059 }
0x26cd   :  { %2851 = vmatmul.mubr.msk.f32.vlgmr.msra.gmra.mrb[20].mxu0 %vm232_vm3, %v2060_v48 }
0x26ce   :  { %3024 = vmatpush3.bf16.msra.mxu0 %v3326_v15  ;;  %2861 = vmatprep.mubr.msk.f32.mxu0 %vm3215_vm0, %v3216_v1  ;;  %v229_v15 = vadd.f32 %v3445_v9, %v3361_v22 }
0x26cf   :  { %3025 = vmatprep.subr.bf16.mxu0 %v3214_v0 }
0x26d2   :  { %3027 = vmatpush3.bf16.msra.mxu0 %v3341_v19 }
0x26d3   :  { %3028 = vmatprep.subr.bf16.mxu0 %v3214_v0 }
0x26d5   :  { %2862 = vmatmul.mubr.msk.f32.vlgmr.msra.gmra.mrb[22].mxu0 %vm232_vm3, %v1965_v31 }
0x26d6   :  { %3030 = vmatpush3.bf16.msra.mxu0 %v3378_v38  ;;  %2872 = vmatprep.mubr.msk.f32.mxu0 %vm3215_vm0, %v3216_v1 }
0x26d7   :  { %3031 = vmatprep.subr.bf16.mxu0 %v3214_v0 }
0x26da   :  { %3033 = vmatpush3.bf16.msra.mxu0 %v3384_v40 }
0x27a8   :  { %v2199_v49 = vpop.f32.mrb[22].mxu0 }
0x27a9   :  { %v2203_v50 = vadd.f32 %v2199_v49, %v229_v15  ;;  %v2863_v51 = vpop.f32.mrb[23].mxu0 }
0x27ab   :  { %3130 = vtanh.f32 %v2203_v50 }
0x27b5   :  { %v3131_v19 = vpop.eup %3130 }
0x27b6   :  { %2209 = vrot.lane.b32.xlu0 %v3131_v19, %s3217_s12  ;;  %v2205_v52 = vmul.f32 0.5, %v3131_v19 }
0x27b8   :  { %v2206_v53 = vadd.f32 0.5, %v2205_v52 }
0x27ba   :  { %v2207_v1 = vmul.f32 %v2206_v53, %v1956_v29 }
0x2828   :  { %v2210_v38 = vpop.permute.xlu0 %2209 }
0x2829   :  { %v2212_v54 = vmul.f32 %v2210_v38, %v2206_v53 }
0x282b   :  { %2214 = vrot.lane.b32.xlu1 %v2212_v54, %s3218_s1 }
0x289d   :  { %v2215_v7 = vpop.permute.xlu1 %2214 }
0x289e   :  { %v2217_v55 = vadd.f32 %v2215_v7, %v2207_v1 }
0x28a0   :  { %3132 = vtanh.f32 %v2217_v55 }
0x28aa   :  { %v3133_v40 = vpop.eup %3132 }
0x28ab   :  { %2220 = vrot.lane.b32.xlu0 %v3133_v40, %s3217_s12 }
0x291d   :  { %v2221_v22 = vpop.permute.xlu0 %2220 }
0x291e   :  { %v2223_v9 = vmul.f32 %v2221_v22, %v2206_v53 }
0x2920   :  { %2225 = vrot.lane.b32.xlu1 %v2223_v9, %s3218_s1 }
0x2992   :  { %v2226_v56 = vpop.permute.xlu1 %2225 }
0x2993   :  { %2873 = vmatmul.mubr.msk.f32.vlgmr.msra.gmra.mrb[20].mxu0 %vm232_vm3, %v2226_v56 }
0x2a66   :  { %v2295_v57 = vpop.f32.mrb[20].mxu0 }
0x2a67   :  { %v3047_v58 = vadd.f32 %v3401_v45, %v2295_v57  ;;  %v2874_v59 = vpop.f32.mrb[21].mxu0  ;;  %v2322_v45 = vld [vmem:[#allocation5 + $0x18] sm:$0xff] }
0x2a68   :  { %v3038_v16 = vpack.c.bf16 %v2322_v45, %v2321_v13 }
0x2a69   :  { %3134 = vtanh.f32 %v3047_v58 }
0x2a6a   :  { %3039 = vmatpush3.bf16.msra.mxu1 %v3038_v16 }
0x2a73   :  { %v3135_v60 = vpop.eup %3134 }
0x2a74   :  { %2304 = vrot.lane.b32.xlu0 %v3135_v60, %s3217_s12  ;;  %v2300_v61 = vmul.f32 0.5, %v3135_v60 }
0x2a76   :  { %v2301_v62 = vadd.f32 0.5, %v2300_v61 }
0x2a78   :  { %v2302_v2 = vmul.f32 %v2301_v62, %v2051_v4 }
0x2ae6   :  { %v2305_v5 = vpop.permute.xlu0 %2304 }
0x2ae7   :  { %v2307_v63 = vmul.f32 %v2305_v5, %v2301_v62 }
0x2ae9   :  { %2309 = vrot.lane.b32.xlu1 %v2307_v63, %s3218_s1 }
0x2b5b   :  { %v2310_v3 = vpop.permute.xlu1 %2309 }
0x2b5c   :  { %v2312_v6 = vadd.f32 %v2310_v3, %v2302_v2 }
0x2b5e   :  { %3136 = vtanh.f32 %v2312_v6 }
0x2b68   :  { %v3137_v17 = vpop.eup %3136 }
0x2b69   :  { %2315 = vrot.lane.b32.xlu0 %v3137_v17, %s3217_s12 }
0x2bdb   :  { %v2316_v18 = vpop.permute.xlu0 %2315 }
0x2bdc   :  { %v2318_v21 = vmul.f32 %v2316_v18, %v2301_v62 }
0x2bde   :  { %2331 = vrot.lane.b32.xlu1 %v2318_v21, %s3218_s1 }
0x2c50   :  { %v2332_v23 = vpop.permute.xlu1 %2331 }
0x2c51   :  { %2884 = vmatmul.mubr.msk.f32.vlgmr.msra.gmra.mrb[16].mxu1 %vm232_vm3, %v2332_v23 }
0x2d24   :  { %v2401_v24 = vpop.f32.mrb[16].mxu1 }
0x2d25   :  { %v2402_v25 = vadd.f32 %v2455_v8, %v2401_v24  ;;  %v2885_v0 = vpop.f32.mrb[17].mxu1 }
0x2d27   :  { %2405 = vst [vmem:[#allocation7] sm:$0xff] %v2402_v25 }
0x2d28   :  { %3193 = shalt.err (!%p3190_p6)
}
0x2d29   :  { %s3194_s3 = scalar_lea.hbm %s3690_s9, 128 }
0x2d2a   :  { %p3195_p7 = scmp.ne.s32.totalorder %s3690_s9, %s3194_s3  ;;  %p3198_p8 = scmp.lt.u32.totalorder %s3194_s3, %s3690_s9 }
0x2d2c   :  { %p3200_p9 = pnand %p3198_p8, %p3195_p7 }
0x2d2e   :  { %3203 = shalt.err (!%p3200_p9)
}
0x2d2f   :  { %2415 = dma.vmem_to_hbm [thread:$0]  %s2413_s2, 128, %s3690_s9, [#allocation4]  }
0x2d30   :  { %3208 = dma.done.wait [#allocation4], 128  }
0x2d31   :  { %3209 = vsyncadd [#allocation4], 4294967168 }
0x2d32   :  { %2419 = vsyncpa [#allocation3], 1 }
0x2d33   :  { %2420 = vsyncpa [#allocation6], 1 }
0x2d34   :  { %2421 = vsyncpa [#allocation4], 1 }

</bundles_post_ra>
